<compile_context>
chip_gen: v5e
topology: v5e:2x2
jax: 0.10.0
libtpu: 0.0.40
codegen_flags: <defaults>
</compile_context>

<pallas_src>
import functools

import jax
import jax.numpy as jnp
from jax import lax
from jax.experimental import pallas as pl
from jax.experimental.pallas import tpu as pltpu


# ---------------------------------------------------------------------------
# Fused kernel: expand 1x1 + BN + ReLU -> depthwise 3x3 (stride folded into the
# tap reads) + BN + ReLU -> project 1x1 + BN (+ shortcut).
# One grid step processes one image; intermediates never leave VMEM.
# ---------------------------------------------------------------------------

def _fused_block_kernel(*refs, H, W, planes, Cout, Ho, Wo, stride, shortcut):
    it = iter(refs)
    x_ref = next(it)
    w1_ref, s1_ref, b1_ref = next(it), next(it), next(it)
    w2_ref, s2_ref, b2_ref = next(it), next(it), next(it)
    w3_ref, s3_ref, b3_ref = next(it), next(it), next(it)
    if shortcut == "conv":
        ws_ref, ss_ref, bs_ref = next(it), next(it), next(it)
    o_ref = next(it)
    hp_ref = next(it)            # VMEM scratch: (H+2, W+2, planes) f32 padded buffer

    x = x_ref[0]                                          # (H, W, Cin) f32
    x2d = x.reshape(H * W, x.shape[-1])
    xb = x2d.astype(jnp.bfloat16)                         # bf16 MXU operand

    # ---- expand: 1x1 conv (MXU, bf16 x bf16 -> f32) + BN + ReLU --------------
    h = jnp.dot(xb, w1_ref[...], preferred_element_type=jnp.float32)
    h = jnp.maximum(h * s1_ref[...] + b1_ref[...], 0.0)   # (H*W, planes) f32

    # ---- depthwise 3x3 (pad=1, stride folded into tap reads) + BN + ReLU -----
    # Zero ONLY the 1-wide halo border strips (the interior is fully overwritten
    # below).  Done every step so correctness never depends on scratch history.
    zrow = jnp.zeros((1, W + 2, planes), jnp.float32)
    zcol = jnp.zeros((H + 2, 1, planes), jnp.float32)
    hp_ref[0:1, :, :] = zrow
    hp_ref[H + 1:H + 2, :, :] = zrow
    hp_ref[:, 0:1, :] = zcol
    hp_ref[:, W + 1:W + 2, :] = zcol
    hp_ref[1:H + 1, 1:W + 1, :] = h.reshape(H, W, planes)

    w2 = w2_ref[...]                                      # (3, 3, planes), tiny

    if stride == 1:
        def tap(di, dj):                                  # contiguous slice
            return hp_ref[di:di + Ho, dj:dj + Wo, :]
    else:
        def tap(di, dj):                                  # strided: only the
            return hp_ref[pl.ds(di, Ho, stride=stride),   # output positions
                          pl.ds(dj, Wo, stride=stride), :]

    # Accumulator initialized from the (0,0) tap; remaining 8 taps added.
    acc = tap(0, 0) * w2[0, 0, :]
    for di in range(3):
        for dj in range(3):
            if di == 0 and dj == 0:
                continue
            acc = acc + tap(di, dj) * w2[di, dj, :]
    dw = jnp.maximum(acc * s2_ref[...] + b2_ref[...], 0.0)   # (Ho, Wo, planes)
    dw2d = dw.reshape(Ho * Wo, planes)

    # ---- project: 1x1 conv + BN (+ shortcut) ---------------------------------
    out = jnp.dot(dw2d.astype(jnp.bfloat16), w3_ref[...],
                  preferred_element_type=jnp.float32)     # (Ho*Wo, Cout)
    out = out * s3_ref[...] + b3_ref[...]

    if shortcut == "identity":
        out = out + x2d                                   # exact f32 residual
    elif shortcut == "conv":
        sc = jnp.dot(xb, ws_ref[...], preferred_element_type=jnp.float32)
        out = out + sc * ss_ref[...] + bs_ref[...]

    o_ref[0] = out.reshape(Ho, Wo, Cout)


# ---------------------------------------------------------------------------
# Wrapper: NCHW in / NCHW out, like the PyTorch module
# (a full network should stay NHWC end-to-end so the boundary transposes vanish)
# ---------------------------------------------------------------------------

def _block_forward_impl(x_nchw, p, stride):
    N, Cin, H, W = x_nchw.shape
    planes = p["w1"].shape[1]
    Cout = p["w3"].shape[1]
    Ho = (H - 1) // stride + 1
    Wo = (W - 1) // stride + 1

    # NCHW -> NHWC at the block boundary (channels on the TPU lane axis).
    x = jnp.transpose(x_nchw, (0, 2, 3, 1)).astype(jnp.float32)

    if stride == 1:
        shortcut = "identity" if Cin == Cout else "conv"
    else:
        shortcut = "none"

    operands = [
        x,
        p["w1"].astype(jnp.bfloat16), p["s1"].reshape(1, planes), p["b1"].reshape(1, planes),
        p["w2"],                      p["s2"].reshape(1, planes), p["b2"].reshape(1, planes),
        p["w3"].astype(jnp.bfloat16), p["s3"].reshape(1, Cout),   p["b3"].reshape(1, Cout),
    ]
    in_specs = [
        pl.BlockSpec((1, H, W, Cin), lambda n: (n, 0, 0, 0)),
        pl.BlockSpec((Cin, planes), lambda n: (0, 0)),
        pl.BlockSpec((1, planes), lambda n: (0, 0)),
        pl.BlockSpec((1, planes), lambda n: (0, 0)),
        pl.BlockSpec((3, 3, planes), lambda n: (0, 0, 0)),
        pl.BlockSpec((1, planes), lambda n: (0, 0)),
        pl.BlockSpec((1, planes), lambda n: (0, 0)),
        pl.BlockSpec((planes, Cout), lambda n: (0, 0)),
        pl.BlockSpec((1, Cout), lambda n: (0, 0)),
        pl.BlockSpec((1, Cout), lambda n: (0, 0)),
    ]

    if shortcut == "conv":
        operands += [p["ws"].astype(jnp.bfloat16),
                     p["ss"].reshape(1, Cout), p["bs"].reshape(1, Cout)]
        in_specs += [pl.BlockSpec((Cin, Cout), lambda n: (0, 0)),
                     pl.BlockSpec((1, Cout), lambda n: (0, 0)),
                     pl.BlockSpec((1, Cout), lambda n: (0, 0))]

    kernel = functools.partial(
        _fused_block_kernel, H=H, W=W, planes=planes, Cout=Cout,
        Ho=Ho, Wo=Wo, stride=stride, shortcut=shortcut)

    out_nhwc = pl.pallas_call(
        kernel,
        out_shape=jax.ShapeDtypeStruct((N, Ho, Wo, Cout), jnp.float32),
        grid=(N,),
        in_specs=in_specs,
        out_specs=pl.BlockSpec((1, Ho, Wo, Cout), lambda n: (n, 0, 0, 0)),
        scratch_shapes=[pltpu.VMEM((H + 2, W + 2, planes), jnp.float32)],
        compiler_params=pltpu.CompilerParams(
            dimension_semantics=("parallel",),
            vmem_limit_bytes=32 * 1024 * 1024),
    )(*operands)

    return jnp.transpose(out_nhwc, (0, 3, 1, 2))          # -> NCHW


block_forward = jax.jit(_block_forward_impl, static_argnums=2)


# ---------------------------------------------------------------------------
# Deterministic parameter init (inference-mode BN folded into scale/bias)
# ---------------------------------------------------------------------------

def init_block_params(key, in_planes, out_planes, expansion, stride):
    planes = expansion * in_planes
    ks = jax.random.split(key, 4)

    def bn_params(k, c):
        kg, kb, km, kv = jax.random.split(k, 4)
        gamma = 1.0 + 0.1 * jax.random.normal(kg, (c,), jnp.float32)
        beta = 0.1 * jax.random.normal(kb, (c,), jnp.float32)
        mean = 0.1 * jax.random.normal(km, (c,), jnp.float32)
        var = jax.random.uniform(kv, (c,), jnp.float32, 0.5, 1.5)
        scale = gamma / jnp.sqrt(var + 1e-5)
        bias = beta - mean * scale
        return scale, bias

    p = {}
    k1a, k1b = jax.random.split(ks[0])
    p["w1"] = 0.1 * jax.random.normal(k1a, (in_planes, planes), jnp.float32)
    p["s1"], p["b1"] = bn_params(k1b, planes)

    k2a, k2b = jax.random.split(ks[1])
    p["w2"] = 0.1 * jax.random.normal(k2a, (3, 3, planes), jnp.float32)
    p["s2"], p["b2"] = bn_params(k2b, planes)

    k3a, k3b = jax.random.split(ks[2])
    p["w3"] = 0.1 * jax.random.normal(k3a, (planes, out_planes), jnp.float32)
    p["s3"], p["b3"] = bn_params(k3b, out_planes)

    if stride == 1 and in_planes != out_planes:
        ksa, ksb = jax.random.split(ks[3])
        p["ws"] = 0.1 * jax.random.normal(ksa, (in_planes, out_planes), jnp.float32)
        p["ss"], p["bs"] = bn_params(ksb, out_planes)
    return p


# ---------------------------------------------------------------------------
# Pure-JAX reference (mirrors the kernel's bf16 MXU operands, f32 accumulate)
# ---------------------------------------------------------------------------

def ref_block_forward(x_nchw, p, stride):
    f32, bf16 = jnp.float32, jnp.bfloat16
    x = jnp.transpose(x_nchw, (0, 2, 3, 1)).astype(f32)
    Cin = x.shape[-1]
    planes = p["w1"].shape[1]
    Cout = p["w3"].shape[1]

    h = jnp.einsum("nhwc,cd->nhwd", x.astype(bf16), p["w1"].astype(bf16),
                   preferred_element_type=f32)
    h = jnp.maximum(h * p["s1"] + p["b1"], 0.0)

    dn = lax.conv_dimension_numbers(h.shape, (3, 3, 1, planes), ("NHWC", "HWIO", "NHWC"))
    wdw = p["w2"].reshape(3, 3, 1, planes)
    d = lax.conv_general_dilated(h, wdw, (stride, stride), ((1, 1), (1, 1)),
                                 dimension_numbers=dn, feature_group_count=planes,
                                 precision=lax.Precision.HIGHEST)
    d = jnp.maximum(d * p["s2"] + p["b2"], 0.0)

    out = jnp.einsum("nhwc,cd->nhwd", d.astype(bf16), p["w3"].astype(bf16),
                     preferred_element_type=f32)
    out = out * p["s3"] + p["b3"]
    if stride == 1:
        if Cin == Cout:
            out = out + x
        else:
            sc = jnp.einsum("nhwc,cd->nhwd", x.astype(bf16), p["ws"].astype(bf16),
                            preferred_element_type=f32)
            out = out + sc * p["ss"] + p["bs"]
    return jnp.transpose(out, (0, 3, 1, 2))


# ---------------------------------------------------------------------------
# Main
# ---------------------------------------------------------------------------

if __name__ == "__main__":
    key = jax.random.PRNGKey(0)
    kx, kp1, kp2, kp3 = jax.random.split(key, 4)

    # Block configs: (in_planes, out_planes, expansion, stride)
    configs = [
        (8, 16, 4, 1),   # stride-1, conv shortcut
        (8, 8, 4, 1),    # stride-1, identity shortcut
        (8, 16, 4, 2),   # stride-2, no shortcut (strided depthwise taps)
    ]
    pkeys = [kp1, kp2, kp3]

    x = jax.random.normal(kx, (2, 8, 16, 16), jnp.float32)   # NCHW, like PyTorch

    for (cin, cout, exp, stride), pk in zip(configs, pkeys):
        params = init_block_params(pk, cin, cout, exp, stride)
        out = jax.block_until_ready(block_forward(x, params, stride))
        ref = jax.block_until_ready(ref_block_forward(x, params, stride))
        assert out.shape == ref.shape, (out.shape, ref.shape)
        err = float(jnp.max(jnp.abs(out - ref)))
        assert err < 2e-3, err

    print("KERNEL_OK")
</pallas_src>

<mosaic_0001>
module attributes {stable_mosaic.version = 11 : i64} {
  func.func @_fused_block_kernel(%arg0: i32, %arg1: memref<1x16x16x8xf32, #tpu.memory_space<vmem>>, %arg2: memref<8x32xbf16, #tpu.memory_space<vmem>>, %arg3: memref<1x32xf32, #tpu.memory_space<vmem>>, %arg4: memref<1x32xf32, #tpu.memory_space<vmem>>, %arg5: memref<3x3x32xf32, #tpu.memory_space<vmem>>, %arg6: memref<1x32xf32, #tpu.memory_space<vmem>>, %arg7: memref<1x32xf32, #tpu.memory_space<vmem>>, %arg8: memref<32x16xbf16, #tpu.memory_space<vmem>>, %arg9: memref<1x16xf32, #tpu.memory_space<vmem>>, %arg10: memref<1x16xf32, #tpu.memory_space<vmem>>, %arg11: memref<8x16xbf16, #tpu.memory_space<vmem>>, %arg12: memref<1x16xf32, #tpu.memory_space<vmem>>, %arg13: memref<1x16xf32, #tpu.memory_space<vmem>>, %arg14: memref<1x16x16x16xf32, #tpu.memory_space<vmem>>, %arg15: memref<18x18x32xf32, #tpu.memory_space<vmem>>) attributes {dimension_semantics = [#tpu.dimension_semantics<parallel>], iteration_bounds = array<i64: 2>, scalar_prefetch = 0 : i64, scratch_operands = 1 : i64, tpu.core_type = #tpu.core_type<tc>, window_params = [{transform_indices = @transform_0, window_bounds = array<i64: 1, 16, 16, 8>}, {pipeline_mode = #tpu.pipeline_mode<synchronous>, transform_indices = @transform_1, window_bounds = array<i64: 8, 32>}, {pipeline_mode = #tpu.pipeline_mode<synchronous>, transform_indices = @transform_2, window_bounds = array<i64: 1, 32>}, {pipeline_mode = #tpu.pipeline_mode<synchronous>, transform_indices = @transform_3, window_bounds = array<i64: 1, 32>}, {pipeline_mode = #tpu.pipeline_mode<synchronous>, transform_indices = @transform_4, window_bounds = array<i64: 3, 3, 32>}, {pipeline_mode = #tpu.pipeline_mode<synchronous>, transform_indices = @transform_5, window_bounds = array<i64: 1, 32>}, {pipeline_mode = #tpu.pipeline_mode<synchronous>, transform_indices = @transform_6, window_bounds = array<i64: 1, 32>}, {pipeline_mode = #tpu.pipeline_mode<synchronous>, transform_indices = @transform_7, window_bounds = array<i64: 32, 16>}, {pipeline_mode = #tpu.pipeline_mode<synchronous>, transform_indices = @transform_8, window_bounds = array<i64: 1, 16>}, {pipeline_mode = #tpu.pipeline_mode<synchronous>, transform_indices = @transform_9, window_bounds = array<i64: 1, 16>}, {pipeline_mode = #tpu.pipeline_mode<synchronous>, transform_indices = @transform_10, window_bounds = array<i64: 8, 16>}, {pipeline_mode = #tpu.pipeline_mode<synchronous>, transform_indices = @transform_11, window_bounds = array<i64: 1, 16>}, {pipeline_mode = #tpu.pipeline_mode<synchronous>, transform_indices = @transform_12, window_bounds = array<i64: 1, 16>}, {transform_indices = @transform_13, window_bounds = array<i64: 1, 16, 16, 16>}]} {
    %c0 = arith.constant 0 : index
    %c0_0 = arith.constant 0 : index
    %c0_1 = arith.constant 0 : index
    %c0_2 = arith.constant 0 : index
    %0 = vector.load %arg1[%c0, %c0_0, %c0_1, %c0_2] : memref<1x16x16x8xf32, #tpu.memory_space<vmem>>, vector<1x16x16x8xf32>
    %1 = vector.shape_cast %0 : vector<1x16x16x8xf32> to vector<16x16x8xf32>
    %2 = vector.shape_cast %1 : vector<16x16x8xf32> to vector<256x8xf32>
    %3 = arith.truncf %2 : vector<256x8xf32> to vector<256x8xbf16>
    %c0_3 = arith.constant 0 : index
    %c0_4 = arith.constant 0 : index
    %4 = vector.load %arg2[%c0_3, %c0_4] : memref<8x32xbf16, #tpu.memory_space<vmem>>, vector<8x32xbf16>
    %cst = arith.constant dense<0.000000e+00> : vector<256x32xf32>
    %5 = tpu.matmul %3, %4, %cst {dimension_numbers = #tpu.dot_dimension_numbers<[1], [0], [0], [1], [0, 0, 1, 1], [], []>} : vector<256x8xbf16>, vector<8x32xbf16>, vector<256x32xf32> -> vector<256x32xf32>
    %c0_5 = arith.constant 0 : index
    %c0_6 = arith.constant 0 : index
    %6 = vector.load %arg3[%c0_5, %c0_6] : memref<1x32xf32, #tpu.memory_space<vmem>>, vector<1x32xf32>
    %7 = vector.broadcast %6 : vector<1x32xf32> to vector<256x32xf32>
    %8 = arith.mulf %5, %7 : vector<256x32xf32>
    %c0_7 = arith.constant 0 : index
    %c0_8 = arith.constant 0 : index
    %9 = vector.load %arg4[%c0_7, %c0_8] : memref<1x32xf32, #tpu.memory_space<vmem>>, vector<1x32xf32>
    %10 = vector.broadcast %9 : vector<1x32xf32> to vector<256x32xf32>
    %11 = arith.addf %8, %10 : vector<256x32xf32>
    %cst_9 = arith.constant 0.000000e+00 : f32
    %12 = vector.broadcast %cst_9 : f32 to vector<256x32xf32>
    %13 = arith.maximumf %11, %12 : vector<256x32xf32>
    %cst_10 = arith.constant 0.000000e+00 : f32
    %14 = vector.broadcast %cst_10 : f32 to vector<1x18x32xf32>
    %cst_11 = arith.constant 0.000000e+00 : f32
    %15 = vector.broadcast %cst_11 : f32 to vector<18x1x32xf32>
    %c0_12 = arith.constant 0 : index
    %c0_13 = arith.constant 0 : index
    %c0_14 = arith.constant 0 : index
    %16 = vector.load %arg15[%c0_12, %c0_13, %c0_14] : memref<18x18x32xf32, #tpu.memory_space<vmem>>, vector<1x18x32xf32>
    tpu.vector_store %arg15[%c0_12, %c0_13, %c0_14], %14 {strides = array<i32>} : memref<18x18x32xf32, #tpu.memory_space<vmem>>, vector<1x18x32xf32>,
    %c17 = arith.constant 17 : index
    %c0_15 = arith.constant 0 : index
    %c0_16 = arith.constant 0 : index
    %17 = vector.load %arg15[%c17, %c0_15, %c0_16] : memref<18x18x32xf32, #tpu.memory_space<vmem>>, vector<1x18x32xf32>
    tpu.vector_store %arg15[%c17, %c0_15, %c0_16], %14 {strides = array<i32>} : memref<18x18x32xf32, #tpu.memory_space<vmem>>, vector<1x18x32xf32>,
    %c0_17 = arith.constant 0 : index
    %c0_18 = arith.constant 0 : index
    %c0_19 = arith.constant 0 : index
    %18 = vector.load %arg15[%c0_17, %c0_18, %c0_19] : memref<18x18x32xf32, #tpu.memory_space<vmem>>, vector<18x1x32xf32>
    tpu.vector_store %arg15[%c0_17, %c0_18, %c0_19], %15 {strides = array<i32>} : memref<18x18x32xf32, #tpu.memory_space<vmem>>, vector<18x1x32xf32>,
    %c0_20 = arith.constant 0 : index
    %c17_21 = arith.constant 17 : index
    %c0_22 = arith.constant 0 : index
    %19 = vector.load %arg15[%c0_20, %c17_21, %c0_22] : memref<18x18x32xf32, #tpu.memory_space<vmem>>, vector<18x1x32xf32>
    tpu.vector_store %arg15[%c0_20, %c17_21, %c0_22], %15 {strides = array<i32>} : memref<18x18x32xf32, #tpu.memory_space<vmem>>, vector<18x1x32xf32>,
    %20 = vector.shape_cast %13 : vector<256x32xf32> to vector<16x16x32xf32>
    %c1 = arith.constant 1 : index
    %c1_23 = arith.constant 1 : index
    %c0_24 = arith.constant 0 : index
    %21 = vector.load %arg15[%c1, %c1_23, %c0_24] : memref<18x18x32xf32, #tpu.memory_space<vmem>>, vector<16x16x32xf32>
    tpu.vector_store %arg15[%c1, %c1_23, %c0_24], %20 {strides = array<i32>} : memref<18x18x32xf32, #tpu.memory_space<vmem>>, vector<16x16x32xf32>,
    %c0_25 = arith.constant 0 : index
    %c0_26 = arith.constant 0 : index
    %c0_27 = arith.constant 0 : index
    %22 = vector.load %arg5[%c0_25, %c0_26, %c0_27] : memref<3x3x32xf32, #tpu.memory_space<vmem>>, vector<3x3x32xf32>
    %c0_28 = arith.constant 0 : index
    %c0_29 = arith.constant 0 : index
    %c0_30 = arith.constant 0 : index
    %23 = vector.load %arg15[%c0_28, %c0_29, %c0_30] : memref<18x18x32xf32, #tpu.memory_space<vmem>>, vector<16x16x32xf32>
    %24 = vector.extract_strided_slice %22 {offsets = [0, 0, 0], sizes = [1, 1, 32], strides = [1, 1, 1]} : vector<3x3x32xf32> to vector<1x1x32xf32>
    %25 = vector.shape_cast %24 : vector<1x1x32xf32> to vector<32xf32>
    %26 = vector.shape_cast %25 : vector<32xf32> to vector<1x1x32xf32>
    %27 = vector.broadcast %26 : vector<1x1x32xf32> to vector<16x16x32xf32>
    %28 = arith.mulf %23, %27 : vector<16x16x32xf32>
    %c0_31 = arith.constant 0 : index
    %c1_32 = arith.constant 1 : index
    %c0_33 = arith.constant 0 : index
    %29 = vector.load %arg15[%c0_31, %c1_32, %c0_33] : memref<18x18x32xf32, #tpu.memory_space<vmem>>, vector<16x16x32xf32>
    %30 = vector.extract_strided_slice %22 {offsets = [0, 1, 0], sizes = [1, 1, 32], strides = [1, 1, 1]} : vector<3x3x32xf32> to vector<1x1x32xf32>
    %31 = vector.shape_cast %30 : vector<1x1x32xf32> to vector<32xf32>
    %32 = vector.shape_cast %31 : vector<32xf32> to vector<1x1x32xf32>
    %33 = vector.broadcast %32 : vector<1x1x32xf32> to vector<16x16x32xf32>
    %34 = arith.mulf %29, %33 : vector<16x16x32xf32>
    %35 = arith.addf %28, %34 : vector<16x16x32xf32>
    %c0_34 = arith.constant 0 : index
    %c2 = arith.constant 2 : index
    %c0_35 = arith.constant 0 : index
    %36 = vector.load %arg15[%c0_34, %c2, %c0_35] : memref<18x18x32xf32, #tpu.memory_space<vmem>>, vector<16x16x32xf32>
    %37 = vector.extract_strided_slice %22 {offsets = [0, 2, 0], sizes = [1, 1, 32], strides = [1, 1, 1]} : vector<3x3x32xf32> to vector<1x1x32xf32>
    %38 = vector.shape_cast %37 : vector<1x1x32xf32> to vector<32xf32>
    %39 = vector.shape_cast %38 : vector<32xf32> to vector<1x1x32xf32>
    %40 = vector.broadcast %39 : vector<1x1x32xf32> to vector<16x16x32xf32>
    %41 = arith.mulf %36, %40 : vector<16x16x32xf32>
    %42 = arith.addf %35, %41 : vector<16x16x32xf32>
    %c1_36 = arith.constant 1 : index
    %c0_37 = arith.constant 0 : index
    %c0_38 = arith.constant 0 : index
    %43 = vector.load %arg15[%c1_36, %c0_37, %c0_38] : memref<18x18x32xf32, #tpu.memory_space<vmem>>, vector<16x16x32xf32>
    %44 = vector.extract_strided_slice %22 {offsets = [1, 0, 0], sizes = [1, 1, 32], strides = [1, 1, 1]} : vector<3x3x32xf32> to vector<1x1x32xf32>
    %45 = vector.shape_cast %44 : vector<1x1x32xf32> to vector<32xf32>
    %46 = vector.shape_cast %45 : vector<32xf32> to vector<1x1x32xf32>
    %47 = vector.broadcast %46 : vector<1x1x32xf32> to vector<16x16x32xf32>
    %48 = arith.mulf %43, %47 : vector<16x16x32xf32>
    %49 = arith.addf %42, %48 : vector<16x16x32xf32>
    %c1_39 = arith.constant 1 : index
    %c1_40 = arith.constant 1 : index
    %c0_41 = arith.constant 0 : index
    %50 = vector.load %arg15[%c1_39, %c1_40, %c0_41] : memref<18x18x32xf32, #tpu.memory_space<vmem>>, vector<16x16x32xf32>
    %51 = vector.extract_strided_slice %22 {offsets = [1, 1, 0], sizes = [1, 1, 32], strides = [1, 1, 1]} : vector<3x3x32xf32> to vector<1x1x32xf32>
    %52 = vector.shape_cast %51 : vector<1x1x32xf32> to vector<32xf32>
    %53 = vector.shape_cast %52 : vector<32xf32> to vector<1x1x32xf32>
    %54 = vector.broadcast %53 : vector<1x1x32xf32> to vector<16x16x32xf32>
    %55 = arith.mulf %50, %54 : vector<16x16x32xf32>
    %56 = arith.addf %49, %55 : vector<16x16x32xf32>
    %c1_42 = arith.constant 1 : index
    %c2_43 = arith.constant 2 : index
    %c0_44 = arith.constant 0 : index
    %57 = vector.load %arg15[%c1_42, %c2_43, %c0_44] : memref<18x18x32xf32, #tpu.memory_space<vmem>>, vector<16x16x32xf32>
    %58 = vector.extract_strided_slice %22 {offsets = [1, 2, 0], sizes = [1, 1, 32], strides = [1, 1, 1]} : vector<3x3x32xf32> to vector<1x1x32xf32>
    %59 = vector.shape_cast %58 : vector<1x1x32xf32> to vector<32xf32>
    %60 = vector.shape_cast %59 : vector<32xf32> to vector<1x1x32xf32>
    %61 = vector.broadcast %60 : vector<1x1x32xf32> to vector<16x16x32xf32>
    %62 = arith.mulf %57, %61 : vector<16x16x32xf32>
    %63 = arith.addf %56, %62 : vector<16x16x32xf32>
    %c2_45 = arith.constant 2 : index
    %c0_46 = arith.constant 0 : index
    %c0_47 = arith.constant 0 : index
    %64 = vector.load %arg15[%c2_45, %c0_46, %c0_47] : memref<18x18x32xf32, #tpu.memory_space<vmem>>, vector<16x16x32xf32>
    %65 = vector.extract_strided_slice %22 {offsets = [2, 0, 0], sizes = [1, 1, 32], strides = [1, 1, 1]} : vector<3x3x32xf32> to vector<1x1x32xf32>
    %66 = vector.shape_cast %65 : vector<1x1x32xf32> to vector<32xf32>
    %67 = vector.shape_cast %66 : vector<32xf32> to vector<1x1x32xf32>
    %68 = vector.broadcast %67 : vector<1x1x32xf32> to vector<16x16x32xf32>
    %69 = arith.mulf %64, %68 : vector<16x16x32xf32>
    %70 = arith.addf %63, %69 : vector<16x16x32xf32>
    %c2_48 = arith.constant 2 : index
    %c1_49 = arith.constant 1 : index
    %c0_50 = arith.constant 0 : index
    %71 = vector.load %arg15[%c2_48, %c1_49, %c0_50] : memref<18x18x32xf32, #tpu.memory_space<vmem>>, vector<16x16x32xf32>
    %72 = vector.extract_strided_slice %22 {offsets = [2, 1, 0], sizes = [1, 1, 32], strides = [1, 1, 1]} : vector<3x3x32xf32> to vector<1x1x32xf32>
    %73 = vector.shape_cast %72 : vector<1x1x32xf32> to vector<32xf32>
    %74 = vector.shape_cast %73 : vector<32xf32> to vector<1x1x32xf32>
    %75 = vector.broadcast %74 : vector<1x1x32xf32> to vector<16x16x32xf32>
    %76 = arith.mulf %71, %75 : vector<16x16x32xf32>
    %77 = arith.addf %70, %76 : vector<16x16x32xf32>
    %c2_51 = arith.constant 2 : index
    %c2_52 = arith.constant 2 : index
    %c0_53 = arith.constant 0 : index
    %78 = vector.load %arg15[%c2_51, %c2_52, %c0_53] : memref<18x18x32xf32, #tpu.memory_space<vmem>>, vector<16x16x32xf32>
    %79 = vector.extract_strided_slice %22 {offsets = [2, 2, 0], sizes = [1, 1, 32], strides = [1, 1, 1]} : vector<3x3x32xf32> to vector<1x1x32xf32>
    %80 = vector.shape_cast %79 : vector<1x1x32xf32> to vector<32xf32>
    %81 = vector.shape_cast %80 : vector<32xf32> to vector<1x1x32xf32>
    %82 = vector.broadcast %81 : vector<1x1x32xf32> to vector<16x16x32xf32>
    %83 = arith.mulf %78, %82 : vector<16x16x32xf32>
    %84 = arith.addf %77, %83 : vector<16x16x32xf32>
    %c0_54 = arith.constant 0 : index
    %c0_55 = arith.constant 0 : index
    %85 = vector.load %arg6[%c0_54, %c0_55] : memref<1x32xf32, #tpu.memory_space<vmem>>, vector<1x32xf32>
    %86 = vector.shape_cast %85 : vector<1x32xf32> to vector<1x1x32xf32>
    %87 = vector.broadcast %86 : vector<1x1x32xf32> to vector<16x16x32xf32>
    %88 = arith.mulf %84, %87 : vector<16x16x32xf32>
    %c0_56 = arith.constant 0 : index
    %c0_57 = arith.constant 0 : index
    %89 = vector.load %arg7[%c0_56, %c0_57] : memref<1x32xf32, #tpu.memory_space<vmem>>, vector<1x32xf32>
    %90 = vector.shape_cast %89 : vector<1x32xf32> to vector<1x1x32xf32>
    %91 = vector.broadcast %90 : vector<1x1x32xf32> to vector<16x16x32xf32>
    %92 = arith.addf %88, %91 : vector<16x16x32xf32>
    %cst_58 = arith.constant 0.000000e+00 : f32
    %93 = vector.broadcast %cst_58 : f32 to vector<16x16x32xf32>
    %94 = arith.maximumf %92, %93 : vector<16x16x32xf32>
    %95 = vector.shape_cast %94 : vector<16x16x32xf32> to vector<256x32xf32>
    %96 = arith.truncf %95 : vector<256x32xf32> to vector<256x32xbf16>
    %c0_59 = arith.constant 0 : index
    %c0_60 = arith.constant 0 : index
    %97 = vector.load %arg8[%c0_59, %c0_60] : memref<32x16xbf16, #tpu.memory_space<vmem>>, vector<32x16xbf16>
    %cst_61 = arith.constant dense<0.000000e+00> : vector<256x16xf32>
    %98 = tpu.matmul %96, %97, %cst_61 {dimension_numbers = #tpu.dot_dimension_numbers<[1], [0], [0], [1], [0, 0, 1, 1], [], []>} : vector<256x32xbf16>, vector<32x16xbf16>, vector<256x16xf32> -> vector<256x16xf32>
    %c0_62 = arith.constant 0 : index
    %c0_63 = arith.constant 0 : index
    %99 = vector.load %arg9[%c0_62, %c0_63] : memref<1x16xf32, #tpu.memory_space<vmem>>, vector<1x16xf32>
    %100 = vector.broadcast %99 : vector<1x16xf32> to vector<256x16xf32>
    %101 = arith.mulf %98, %100 : vector<256x16xf32>
    %c0_64 = arith.constant 0 : index
    %c0_65 = arith.constant 0 : index
    %102 = vector.load %arg10[%c0_64, %c0_65] : memref<1x16xf32, #tpu.memory_space<vmem>>, vector<1x16xf32>
    %103 = vector.broadcast %102 : vector<1x16xf32> to vector<256x16xf32>
    %104 = arith.addf %101, %103 : vector<256x16xf32>
    %c0_66 = arith.constant 0 : index
    %c0_67 = arith.constant 0 : index
    %105 = vector.load %arg11[%c0_66, %c0_67] : memref<8x16xbf16, #tpu.memory_space<vmem>>, vector<8x16xbf16>
    %cst_68 = arith.constant dense<0.000000e+00> : vector<256x16xf32>
    %106 = tpu.matmul %3, %105, %cst_68 {dimension_numbers = #tpu.dot_dimension_numbers<[1], [0], [0], [1], [0, 0, 1, 1], [], []>} : vector<256x8xbf16>, vector<8x16xbf16>, vector<256x16xf32> -> vector<256x16xf32>
    %c0_69 = arith.constant 0 : index
    %c0_70 = arith.constant 0 : index
    %107 = vector.load %arg12[%c0_69, %c0_70] : memref<1x16xf32, #tpu.memory_space<vmem>>, vector<1x16xf32>
    %108 = vector.broadcast %107 : vector<1x16xf32> to vector<256x16xf32>
    %109 = arith.mulf %106, %108 : vector<256x16xf32>
    %110 = arith.addf %104, %109 : vector<256x16xf32>
    %c0_71 = arith.constant 0 : index
    %c0_72 = arith.constant 0 : index
    %111 = vector.load %arg13[%c0_71, %c0_72] : memref<1x16xf32, #tpu.memory_space<vmem>>, vector<1x16xf32>
    %112 = vector.broadcast %111 : vector<1x16xf32> to vector<256x16xf32>
    %113 = arith.addf %110, %112 : vector<256x16xf32>
    %114 = vector.shape_cast %113 : vector<256x16xf32> to vector<16x16x16xf32>
    %c0_73 = arith.constant 0 : index
    %c0_74 = arith.constant 0 : index
    %c0_75 = arith.constant 0 : index
    %c0_76 = arith.constant 0 : index
    %115 = vector.load %arg14[%c0_73, %c0_74, %c0_75, %c0_76] : memref<1x16x16x16xf32, #tpu.memory_space<vmem>>, vector<1x16x16x16xf32>
    %116 = vector.shape_cast %115 : vector<1x16x16x16xf32> to vector<16x16x16xf32>
    %117 = vector.shape_cast %114 : vector<16x16x16xf32> to vector<1x16x16x16xf32>
    tpu.vector_store %arg14[%c0_73, %c0_74, %c0_75, %c0_76], %117 {strides = array<i32>} : memref<1x16x16x16xf32, #tpu.memory_space<vmem>>, vector<1x16x16x16xf32>,
    return
  }
  func.func @transform_0(%arg0: i32) -> (i32, i32, i32, i32) {
    %c0_i32 = arith.constant 0 : i32
    %c0_i32_0 = arith.constant 0 : i32
    %c0_i32_1 = arith.constant 0 : i32
    %c0_i32_2 = arith.constant 0 : i32
    return %arg0, %c0_i32, %c0_i32_0, %c0_i32_1 : i32, i32, i32, i32
  }
  func.func @transform_1(%arg0: i32) -> (i32, i32) {
    %c0_i32 = arith.constant 0 : i32
    %c0_i32_0 = arith.constant 0 : i32
    %c0_i32_1 = arith.constant 0 : i32
    return %c0_i32, %c0_i32_0 : i32, i32
  }
  func.func @transform_2(%arg0: i32) -> (i32, i32) {
    %c0_i32 = arith.constant 0 : i32
    %c0_i32_0 = arith.constant 0 : i32
    %c0_i32_1 = arith.constant 0 : i32
    return %c0_i32, %c0_i32_0 : i32, i32
  }
  func.func @transform_3(%arg0: i32) -> (i32, i32) {
    %c0_i32 = arith.constant 0 : i32
    %c0_i32_0 = arith.constant 0 : i32
    %c0_i32_1 = arith.constant 0 : i32
    return %c0_i32, %c0_i32_0 : i32, i32
  }
  func.func @transform_4(%arg0: i32) -> (i32, i32, i32) {
    %c0_i32 = arith.constant 0 : i32
    %c0_i32_0 = arith.constant 0 : i32
    %c0_i32_1 = arith.constant 0 : i32
    %c0_i32_2 = arith.constant 0 : i32
    return %c0_i32, %c0_i32_0, %c0_i32_1 : i32, i32, i32
  }
  func.func @transform_5(%arg0: i32) -> (i32, i32) {
    %c0_i32 = arith.constant 0 : i32
    %c0_i32_0 = arith.constant 0 : i32
    %c0_i32_1 = arith.constant 0 : i32
    return %c0_i32, %c0_i32_0 : i32, i32
  }
  func.func @transform_6(%arg0: i32) -> (i32, i32) {
    %c0_i32 = arith.constant 0 : i32
    %c0_i32_0 = arith.constant 0 : i32
    %c0_i32_1 = arith.constant 0 : i32
    return %c0_i32, %c0_i32_0 : i32, i32
  }
  func.func @transform_7(%arg0: i32) -> (i32, i32) {
    %c0_i32 = arith.constant 0 : i32
    %c0_i32_0 = arith.constant 0 : i32
    %c0_i32_1 = arith.constant 0 : i32
    return %c0_i32, %c0_i32_0 : i32, i32
  }
  func.func @transform_8(%arg0: i32) -> (i32, i32) {
    %c0_i32 = arith.constant 0 : i32
    %c0_i32_0 = arith.constant 0 : i32
    %c0_i32_1 = arith.constant 0 : i32
    return %c0_i32, %c0_i32_0 : i32, i32
  }
  func.func @transform_9(%arg0: i32) -> (i32, i32) {
    %c0_i32 = arith.constant 0 : i32
    %c0_i32_0 = arith.constant 0 : i32
    %c0_i32_1 = arith.constant 0 : i32
    return %c0_i32, %c0_i32_0 : i32, i32
  }
  func.func @transform_10(%arg0: i32) -> (i32, i32) {
    %c0_i32 = arith.constant 0 : i32
    %c0_i32_0 = arith.constant 0 : i32
    %c0_i32_1 = arith.constant 0 : i32
    return %c0_i32, %c0_i32_0 : i32, i32
  }
  func.func @transform_11(%arg0: i32) -> (i32, i32) {
    %c0_i32 = arith.constant 0 : i32
    %c0_i32_0 = arith.constant 0 : i32
    %c0_i32_1 = arith.constant 0 : i32
    return %c0_i32, %c0_i32_0 : i32, i32
  }
  func.func @transform_12(%arg0: i32) -> (i32, i32) {
    %c0_i32 = arith.constant 0 : i32
    %c0_i32_0 = arith.constant 0 : i32
    %c0_i32_1 = arith.constant 0 : i32
    return %c0_i32, %c0_i32_0 : i32, i32
  }
  func.func @transform_13(%arg0: i32) -> (i32, i32, i32, i32) {
    %c0_i32 = arith.constant 0 : i32
    %c0_i32_0 = arith.constant 0 : i32
    %c0_i32_1 = arith.constant 0 : i32
    %c0_i32_2 = arith.constant 0 : i32
    return %arg0, %c0_i32, %c0_i32_0, %c0_i32_1 : i32, i32, i32, i32
  }
}

</mosaic_0001>

<bundles_post_ra>
// kernel: _block_forward_impl.1
= control target key start
LH: loop header
LB: loop body
LE: loop exit
PB: predicated region body
PF: predicated region fallthrough
CT: control target
= control target key end

     0   :  { %s2470_s25 = smov 0   ;;  %s3713_s0 = inlined_call_operand.vmem [shape: f32[2,16,16,8], index: 0, kind: input, shape index: {}]   ;;  %s3714_s1 = inlined_call_operand.vmem [shape: bf16[8,32], index: 1, kind: input, shape index: {}]   ;;  %s3715_s2 = inlined_call_operand.vmem [shape: f32[1,32], index: 2, kind: input, shape index: {}]   ;;  %s3716_s3 = inlined_call_operand.vmem [shape: f32[1,32], index: 3, kind: input, shape index: {}]   ;;  %s3717_s4 = inlined_call_operand.vmem [shape: f32[3,3,32], index: 4, kind: input, shape index: {}]   ;;  %s3718_s5 = inlined_call_operand.vmem [shape: f32[1,32], index: 5, kind: input, shape index: {}]   ;;  %s3719_s6 = inlined_call_operand.vmem [shape: f32[1,32], index: 6, kind: input, shape index: {}]   ;;  %s3720_s7 = inlined_call_operand.vmem [shape: bf16[32,16], index: 7, kind: input, shape index: {}]   ;;  %s3721_s8 = inlined_call_operand.vmem [shape: f32[1,16], index: 8, kind: input, shape index: {}]   ;;  %s3722_s9 = inlined_call_operand.vmem [shape: f32[1,16], index: 9, kind: input, shape index: {}]   ;;  %s3723_s10 = inlined_call_operand.vmem [shape: bf16[8,16], index: 10, kind: input, shape index: {}]   ;;  %s3724_s11 = inlined_call_operand.vmem [shape: f32[1,16], index: 11, kind: input, shape index: {}]   ;;  %s3725_s12 = inlined_call_operand.vmem [shape: f32[1,16], index: 12, kind: input, shape index: {}]   ;;  %s3726_s13 = inlined_call_operand.vmem [shape: f32[2,16,16,16], index: 13, kind: output, shape index: {}]  }
   0x1 LB: > { %s2291_s26 = sadd.s32 4294967295, %s2397_s25   ;;  %p2295_p0 = scmp.ge.s32.totalorder %s2397_s25, 1  ;;  %s2397_s25 = sphi %s2470_s25, %s23_s25  }
   0x2   : > { %p387_p1 = scmp.lt.s32.totalorder %s2397_s25, 3 }
   0x4   : > { %p388_p2 = pnand %p2295_p0, %p387_p1 }
   0x6   : > { %391 = sbr.rel (%p388_p2) target bundleno = 625 (0x271), region = 72 }
   0xb   : > { %v490_v0 = vld [vmem:[%s3714_s1] sm:$0xf]  ;;  %vm540_vm0 = vcmask 1043456   ;;  %p431_p3 = scmp.lt.s32.totalorder %s2291_s26, 1  ;;  %vm491_vm1 = vcmask 64512   ;;  %vm737_vm2 = vcmask 261120  }
   0xc   : > { %v542_v1 = vsel %vm540_vm0, %v490_v0, 0  ;;  %v2399_v23 = vmov 0.0   ;;  %vm746_vm3 = vcmask 253952   ;;  %vm740_vm4 = vcmask 254976   ;;  %v2597_v29 = vld [vmem:[%s3715_s2] ss:$0 sm:$0xff] }
   0xd   : > { %551 = vmatpush.bf16.msra.mxu0 %v542_v1  ;;  %s3743_s26 = smov (!%p431_p3, %s2291_s26), 1  ;;  %2362 = vmatpush.bf16.msra.mxu3 %v542_v1  ;;  %738 = vst.msk [vmem:[#allocation2] sm:$0xff] %vm737_vm2, %v2399_v23  ;;  %v2606_v30 = vld [vmem:[%s3716_s3] ss:$0 sm:$0xff]  ;;  %v2361_v52 = vld [vmem:[%s3720_s7 + $0x8] sm:$0xff]  ;;  %vm2203_vm5 = vcmask 130048  }
   0xe   : > { %s2358_s29 = sshll.u32 %s3743_s26, 8  ;;  %739 = vst.msk [vmem:[#allocation2 + $0x8] sm:$0xff] %vm737_vm2, %v2399_v23  ;;  %v816_v40 = vld [vmem:[%s3717_s4] sm:$0x7]  ;;  %1851 = vmatpush.bf16.msra.mxu1 %v2361_v52  ;;  %v817_v61 = vld [vmem:[%s3717_s4 + $0x4] sm:$0x7] }
   0xf   : > { %s2490_s15 = scalar_lea.vmem %s3713_s0, %s2358_s29  ;;  %747 = vst.msk [vmem:[#allocation2] sm:$0x1] %vm746_vm3, %v2399_v23  ;;  %v2006_v42 = vld [vmem:[%s3723_s10] sm:$0xf]  ;;  %v2652_v45 = vperm.slane %v816_v40, 0  ;;  %v2654_v47 = vperm.slane %v816_v40, 1  ;;  %s3254_s28 = scalar_lea.vmem %s3726_s13, %s2358_s29 }
  0x10   : > { %v442_v2 = vld [vmem:[%s2490_s15] sm:$0xff]  ;;  %v443_v3 = vld [vmem:[%s2490_s15 + $0x8] sm:$0xff]  ;;  %v444_v5 = vld [vmem:[%s2490_s15 + $0x10] sm:$0xff]  ;;  %748 = vst.msk [vmem:[#allocation2 + $0x18] sm:$0x1] %vm746_vm3, %v2399_v23  ;;  %v2008_v44 = vsel %vm540_vm0, %v2006_v42, 0 }
  0x11   : > { %v2494_v4 = vpack.c.bf16 %v443_v3, %v442_v2  ;;  %v445_v6 = vld [vmem:[%s2490_s15 + $0x18] sm:$0xff]  ;;  %v446_v8 = vld [vmem:[%s2490_s15 + $0x20] sm:$0xff]  ;;  %v447_v9 = vld [vmem:[%s2490_s15 + $0x28] sm:$0xff]  ;;  %749 = vst.msk [vmem:[#allocation2 + $0x30] sm:$0x1] %vm746_vm3, %v2399_v23  ;;  %2017 = vmatpush.bf16.msra.mxu2 %v2008_v44  ;;  %v2672_v58 = vperm.slane %v816_v40, 2  ;;  %2363 = vmatpush.bf16.msrb.mxu3 %v2361_v52 }
  0x12   : > { %v2500_v7 = vpack.c.bf16 %v445_v6, %v444_v5  ;;  %v2506_v10 = vpack.c.bf16 %v447_v9, %v446_v8  ;;  %v448_v11 = vld [vmem:[%s2490_s15 + $0x30] sm:$0xff]  ;;  %v449_v12 = vld [vmem:[%s2490_s15 + $0x38] sm:$0xff]  ;;  %v450_v14 = vld [vmem:[%s2490_s15 + $0x40] sm:$0xff]  ;;  %766 = vst.msk [vmem:[#allocation2 + $0x29] sm:$0x1] %vm746_vm3, %v2399_v23 }
  0x13   : > { %2300 = vmatmul.msk.bf16.vlgmr.msra.gmra.mxu0 %vm491_vm1, %v2494_v4  ;;  %v2512_v13 = vpack.c.bf16 %v449_v12, %v448_v11  ;;  %v451_v15 = vld [vmem:[%s2490_s15 + $0x48] sm:$0xff]  ;;  %v452_v17 = vld [vmem:[%s2490_s15 + $0x50] sm:$0xff]  ;;  %v453_v18 = vld [vmem:[%s2490_s15 + $0x58] sm:$0xff]  ;;  %767 = vst.msk [vmem:[#allocation2 + $0x41] sm:$0x1] %vm746_vm3, %v2399_v23  ;;  %v2691_v11 = vperm.slane %v817_v61, 0 }
  0x14   : > { %v2518_v16 = vpack.c.bf16 %v451_v15, %v450_v14  ;;  %v2524_v19 = vpack.c.bf16 %v453_v18, %v452_v17  ;;  %v454_v20 = vld [vmem:[%s2490_s15 + $0x60] sm:$0xff]  ;;  %v455_v21 = vld [vmem:[%s2490_s15 + $0x68] sm:$0xff]  ;;  %743 = vst.msk [vmem:[#allocation2 + $0x198] sm:$0xff] %vm737_vm2, %v2399_v23  ;;  %v456_v24 = vld [vmem:[%s2490_s15 + $0x70] sm:$0xff]  ;;  %2340 = vmatmul.msk.bf16.vlgmr.msra.gmra.mxu2 %vm491_vm1, %v2494_v4 }
  0x15   : > { %v2530_v22 = vpack.c.bf16 %v455_v21, %v454_v20  ;;  %744 = vst.msk [vmem:[#allocation2 + $0x1a0] sm:$0xff] %vm737_vm2, %v2399_v23  ;;  %v457_v25 = vld [vmem:[%s2490_s15 + $0x78] sm:$0xff]  ;;  %v458_v27 = vld [vmem:[%s2490_s15 + $0x80] sm:$0xff]  ;;  %v459_v28 = vld [vmem:[%s2490_s15 + $0x88] sm:$0xff] }
  0x16   : > { %741 = vst.msk [vmem:[#allocation2 + $0x10] sm:$0x3] %vm740_vm4, %v2399_v23  ;;  %v2560_v26 = vpack.c.bf16 %v457_v25, %v456_v24  ;;  %v2608_v31 = vpack.c.bf16 %v459_v28, %v458_v27  ;;  %v468_v33 = vld [vmem:[%s2490_s15 + $0xd0] sm:$0xff]  ;;  %v469_v35 = vld [vmem:[%s2490_s15 + $0xd8] sm:$0xff]  ;;  %v884_v46 = vld [vmem:[#allocation2 + $0x1] sm:$0xff]  ;;  %v2702_v27 = vperm.slane %v817_v61, 1 }
  0x17   : > { %765 = vst.msk [vmem:[#allocation2 + $0x11] sm:$0x1] %vm746_vm3, %v2399_v23  ;;  %v2619_v36 = vpack.c.bf16 %v469_v35, %v468_v33  ;;  %v460_v48 = vld [vmem:[%s2490_s15 + $0x90] sm:$0xff]  ;;  %v461_v49 = vld [vmem:[%s2490_s15 + $0x98] sm:$0xff]  ;;  %v819_v50 = vld [vmem:[#allocation2] sm:$0xff]  ;;  %v917_v57 = vmul.f32 %v2654_v47, %v884_v46  ;;  %v2704_v28 = vperm.slane %v817_v61, 2 }
  0x18   : > { %745 = vst.msk [vmem:[#allocation2 + $0x1a8] sm:$0x3] %vm740_vm4, %v2399_v23  ;;  %v2666_v53 = vpack.c.bf16 %v461_v49, %v460_v48  ;;  %v820_v54 = vld [vmem:[#allocation2 + $0x8] sm:$0xff]  ;;  %v852_v55 = vmul.f32 %v2652_v45, %v819_v50  ;;  %v470_v60 = vld [vmem:[%s2490_s15 + $0xe0] sm:$0xff] }
  0x19   : > { %750 = vst.msk [vmem:[#allocation2 + $0x48] sm:$0x1] %vm746_vm3, %v2399_v23  ;;  %2313 = vmatmul.msk.bf16.vlgmr.msra.gmra.mxu3 %vm491_vm1, %v2619_v36  ;;  %v981_v62 = vld [vmem:[#allocation2 + $0x2] sm:$0xff]  ;;  %v853_v3 = vmul.f32 %v2652_v45, %v820_v54 }
  0x1a   : > { %751 = vst.msk [vmem:[#allocation2 + $0x60] sm:$0x1] %vm746_vm3, %v2399_v23  ;;  %v471_v0 = vld [vmem:[%s2490_s15 + $0xe8] sm:$0xff]  ;;  %v2360_v2 = vld [vmem:[%s3720_s7] sm:$0xff]  ;;  %v949_v6 = vadd.f32 %v917_v57, %v852_v55  ;;  %v1014_v9 = vmul.f32 %v2672_v58, %v981_v62 }
  0x1b   : > { %752 = vst.msk [vmem:[#allocation2 + $0x78] sm:$0x1] %vm746_vm3, %v2399_v23  ;;  %v2680_v1 = vpack.c.bf16 %v471_v0, %v470_v60  ;;  %1852 = vmatpush.bf16.msra.mxu1 %v2360_v2  ;;  %2364 = vmatpush.bf16.msrb.mxu3 %v2360_v2  ;;  %v472_v60 = vld [vmem:[%s2490_s15 + $0xf0] sm:$0xff]  ;;  %v473_v0 = vld [vmem:[%s2490_s15 + $0xf8] sm:$0xff] }
  0x1c   : > { %753 = vst.msk [vmem:[#allocation2 + $0x90] sm:$0x1] %vm746_vm3, %v2399_v23  ;;  %v1046_v18 = vadd.f32 %v1014_v9, %v949_v6  ;;  %v2738_v6 = vpack.c.bf16 %v473_v0, %v472_v60 }
  0x1d   : > { %754 = vst.msk [vmem:[#allocation2 + $0xa8] sm:$0x1] %vm746_vm3, %v2399_v23  ;;  %v885_v56 = vld [vmem:[#allocation2 + $0x9] sm:$0xff] }
  0x1e   : > { %755 = vst.msk [vmem:[#allocation2 + $0xc0] sm:$0x1] %vm746_vm3, %v2399_v23  ;;  %v918_v4 = vmul.f32 %v2654_v47, %v885_v56  ;;  %v982_v8 = vld [vmem:[#allocation2 + $0xa] sm:$0xff] }
  0x1f   : > { %756 = vst.msk [vmem:[#allocation2 + $0xd8] sm:$0x1] %vm746_vm3, %v2399_v23  ;;  %v1015_v17 = vmul.f32 %v2672_v58, %v982_v8  ;;  %2365 = vmatpush.bf16.msra.mxu3 %v2008_v44 }
  0x20   : > { %757 = vst.msk [vmem:[#allocation2 + $0xf0] sm:$0x1] %vm746_vm3, %v2399_v23  ;;  %v950_v15 = vadd.f32 %v918_v4, %v853_v3 }
  0x21   : > { %758 = vst.msk [vmem:[#allocation2 + $0x108] sm:$0x1] %vm746_vm3, %v2399_v23 }
  0x22   : > { %759 = vst.msk [vmem:[#allocation2 + $0x120] sm:$0x1] %vm746_vm3, %v2399_v23 }
  0x23   : > { %2301 = vmatmul.msk.bf16.gmra.mxu0 %vm491_vm1, %v2500_v7  ;;  %760 = vst.msk [vmem:[#allocation2 + $0x138] sm:$0x1] %vm746_vm3, %v2399_v23 }
  0x24   : > { %761 = vst.msk [vmem:[#allocation2 + $0x150] sm:$0x1] %vm746_vm3, %v2399_v23  ;;  %2341 = vmatmul.msk.bf16.gmra.mxu2 %vm491_vm1, %v2500_v7 }
  0x25   : > { %762 = vst.msk [vmem:[#allocation2 + $0x168] sm:$0x1] %vm746_vm3, %v2399_v23 }
  0x26   : > { %763 = vst.msk [vmem:[#allocation2 + $0x180] sm:$0x1] %vm746_vm3, %v2399_v23 }
  0x27   : > { %768 = vst.msk [vmem:[#allocation2 + $0x59] sm:$0x1] %vm746_vm3, %v2399_v23 }
  0x28   : > { %769 = vst.msk [vmem:[#allocation2 + $0x71] sm:$0x1] %vm746_vm3, %v2399_v23 }
  0x29   : > { %770 = vst.msk [vmem:[#allocation2 + $0x89] sm:$0x1] %vm746_vm3, %v2399_v23  ;;  %2314 = vmatmul.msk.bf16.gmra.mxu3 %vm491_vm1, %v2680_v1 }
  0x2a   : > { %771 = vst.msk [vmem:[#allocation2 + $0xa1] sm:$0x1] %vm746_vm3, %v2399_v23 }
  0x2b   : > { %772 = vst.msk [vmem:[#allocation2 + $0xb9] sm:$0x1] %vm746_vm3, %v2399_v23 }
  0x2c   : > { %773 = vst.msk [vmem:[#allocation2 + $0xd1] sm:$0x1] %vm746_vm3, %v2399_v23 }
  0x2d   : > { %3732 = vst [vmem:[#allocation3_spill] sm:$0xff] %v2619_v36 }
  0x2e   : > { %774 = vst.msk [vmem:[#allocation2 + $0xe9] sm:$0x1] %vm746_vm3, %v2399_v23 }
  0x2f   : > { %775 = vst.msk [vmem:[#allocation2 + $0x101] sm:$0x1] %vm746_vm3, %v2399_v23 }
  0x30   : > { %776 = vst.msk [vmem:[#allocation2 + $0x119] sm:$0x1] %vm746_vm3, %v2399_v23 }
  0x31   : > { %777 = vst.msk [vmem:[#allocation2 + $0x131] sm:$0x1] %vm746_vm3, %v2399_v23 }
  0x32   : > { %778 = vst.msk [vmem:[#allocation2 + $0x149] sm:$0x1] %vm746_vm3, %v2399_v23 }
  0x33   : > { %2302 = vmatmul.msk.bf16.gmra.mxu0 %vm491_vm1, %v2506_v10  ;;  %779 = vst.msk [vmem:[#allocation2 + $0x161] sm:$0x1] %vm746_vm3, %v2399_v23 }
  0x34   : > { %780 = vst.msk [vmem:[#allocation2 + $0x179] sm:$0x1] %vm746_vm3, %v2399_v23  ;;  %2342 = vmatmul.msk.bf16.gmra.mxu2 %vm491_vm1, %v2506_v10 }
  0x35   : > { %781 = vst.msk [vmem:[#allocation2 + $0x191] sm:$0x1] %vm746_vm3, %v2399_v23 }
  0x36   : > { %764 = vst.msk [vmem:[#allocation2 + $0x198] sm:$0x1] %vm746_vm3, %v2399_v23 }
  0x37   : > { %782 = vst.msk [vmem:[#allocation2 + $0x1a9] sm:$0x1] %vm746_vm3, %v2399_v23  ;;  %v818_v23 = vld [vmem:[%s3717_s4 + $0x8] sm:$0x7] }
  0x38   : > { %3733 = vst [vmem:[#allocation4_spill] sm:$0xff] %v2680_v1 }
  0x39   : > { %3734 = vst [vmem:[#allocation5_spill] sm:$0xff] %v2738_v6  ;;  %2315 = vmatmul.msk.bf16.gmra.mxu3 %vm491_vm1, %v2738_v6 }
  0x43   : > { %2303 = vmatmul.msk.bf16.gmra.mxu0 %vm491_vm1, %v2512_v13 }
  0x44   : > { %2343 = vmatmul.msk.bf16.gmra.mxu2 %vm491_vm1, %v2512_v13 }
  0x53   : > { %2304 = vmatmul.msk.bf16.gmra.mxu0 %vm491_vm1, %v2518_v16 }
  0x54   : > { %2344 = vmatmul.msk.bf16.gmra.mxu2 %vm491_vm1, %v2518_v16 }
  0x63   : > { %2305 = vmatmul.msk.bf16.gmra.mxu0 %vm491_vm1, %v2524_v19 }
  0x64   : > { %2345 = vmatmul.msk.bf16.gmra.mxu2 %vm491_vm1, %v2524_v19 }
  0x73   : > { %2306 = vmatmul.msk.bf16.gmra.mxu0 %vm491_vm1, %v2530_v22 }
  0x74   : > { %2346 = vmatmul.msk.bf16.gmra.mxu2 %vm491_vm1, %v2530_v22 }
  0x83   : > { %2307 = vmatmul.msk.bf16.gmra.mxu0 %vm491_vm1, %v2560_v26 }
  0x84   : > { %2347 = vmatmul.msk.bf16.gmra.mxu2 %vm491_vm1, %v2560_v26 }
  0x90   : > { %v553_v32 = vpop.f32.mrf.mxu0 }
  0x91   : > { %v637_v34 = vmul.f32 %v2597_v29, %v553_v32  ;;  %v1047_v32 = vadd.f32 %v1015_v17, %v950_v15 }
  0x93   : > { %v673_v37 = vadd.f32 %v2606_v30, %v637_v34  ;;  %2308 = vmatmul.msk.bf16.gmra.mxu0 %vm491_vm1, %v2608_v31 }
  0x94   : > { %2348 = vmatmul.msk.bf16.gmra.mxu2 %vm491_vm1, %v2608_v31 }
  0x95   : > { %v705_v38 = vmax.f32 %v673_v37, 0.0  ;;  %v462_v37 = vld [vmem:[%s2490_s15 + $0xa0] sm:$0xff] }
  0x97   : > { %784 = vst.msk [vmem:[#allocation2 + $0x19] sm:$0xff] %vm737_vm2, %v705_v38  ;;  %v463_v38 = vld [vmem:[%s2490_s15 + $0xa8] sm:$0xff] }
  0x98   : > { %v555_v39 = vpop.f32.mrf.mxu0  ;;  %v2714_v46 = vpack.c.bf16 %v463_v38, %v462_v37 }
  0x99   : > { %v638_v41 = vmul.f32 %v2597_v29, %v555_v39 }
  0x9b   : > { %v674_v43 = vadd.f32 %v2606_v30, %v638_v41  ;;  %v2710_v41 = vperm.slane %v818_v23, 0 }
  0x9d   : > { %v706_v51 = vmax.f32 %v674_v43, 0.0 }
  0x9e   : > { %v1078_v12 = vld [vmem:[#allocation2 + $0x18] sm:$0xff] }
  0x9f   : > { %785 = vst.msk [vmem:[#allocation2 + $0x21] sm:$0xff] %vm737_vm2, %v706_v51  ;;  %v1111_v20 = vmul.f32 %v2691_v11, %v1078_v12  ;;  %v1175_v33 = vld [vmem:[#allocation2 + $0x19] sm:$0xff]  ;;  %v854_v2 = vmul.f32 %v1078_v12, %v2652_v45 }
  0xa0   : > { %v558_v59 = vpop.f32.mrf.mxu0  ;;  %v1208_v43 = vmul.f32 %v2702_v27, %v1175_v33  ;;  %v919_v3 = vmul.f32 %v1175_v33, %v2654_v47 }
  0xa1   : > { %v639_v63 = vmul.f32 %v2597_v29, %v558_v59  ;;  %v1143_v40 = vadd.f32 %v1111_v20, %v1046_v18  ;;  %v2725_v59 = vperm.slane %v818_v23, 1 }
  0xa3   : > { %v675_v5 = vadd.f32 %v2606_v30, %v639_v63  ;;  %2309 = vmatmul.msk.bf16.gmra.mxu0 %vm491_vm1, %v2666_v53  ;;  %v1240_v51 = vadd.f32 %v1208_v43, %v1143_v40  ;;  %v2730_v63 = vperm.slane %v818_v23, 2  ;;  %v951_v23 = vadd.f32 %v919_v3, %v854_v2  ;;  %v2773_v2 = vld [vmem:[%s3719_s6] ss:$0 sm:$0xff] }
  0xa4   : > { %2349 = vmatmul.msk.bf16.gmra.mxu2 %vm491_vm1, %v2666_v53 }
  0xa5   : > { %v707_v14 = vmax.f32 %v675_v5, 0.0 }
  0xa6   : > { %v1079_v24 = vld [vmem:[#allocation2 + $0x20] sm:$0xff] }
  0xa7   : > { %786 = vst.msk [vmem:[#allocation2 + $0x31] sm:$0xff] %vm737_vm2, %v707_v14  ;;  %v1272_v34 = vld [vmem:[#allocation2 + $0x1a] sm:$0xff]  ;;  %v1112_v39 = vmul.f32 %v2691_v11, %v1079_v24  ;;  %v1273_v61 = vld [vmem:[#allocation2 + $0x22] sm:$0xff]  ;;  %v855_v8 = vmul.f32 %v1079_v24, %v2652_v45 }
  0xa8   : > { %v560_v21 = vpop.f32.mrf.mxu0  ;;  %v1305_v44 = vmul.f32 %v2704_v28, %v1272_v34  ;;  %v1176_v48 = vld [vmem:[#allocation2 + $0x21] sm:$0xff]  ;;  %v1016_v14 = vmul.f32 %v1272_v34, %v2672_v58  ;;  %v1306_v12 = vmul.f32 %v2704_v28, %v1273_v61 }
  0xa9   : > { %v640_v25 = vmul.f32 %v2597_v29, %v560_v21  ;;  %v1144_v50 = vadd.f32 %v1112_v39, %v1047_v32  ;;  %v1209_v56 = vmul.f32 %v2702_v27, %v1176_v48  ;;  %v920_v9 = vmul.f32 %v1176_v48, %v2654_v47 }
  0xaa   : > { %v1337_v57 = vadd.f32 %v1305_v44, %v1240_v51  ;;  %v1048_v40 = vadd.f32 %v1016_v14, %v951_v23 }
  0xab   : > { %v676_v35 = vadd.f32 %v2606_v30, %v640_v25  ;;  %v1241_v4 = vadd.f32 %v1209_v56, %v1144_v50  ;;  %v952_v39 = vadd.f32 %v920_v9, %v855_v8  ;;  %v1017_v50 = vmul.f32 %v1273_v61, %v2672_v58  ;;  %v465_v56 = vld [vmem:[%s2490_s15 + $0xb8] sm:$0xff] }
  0xad   : > { %v708_v42 = vmax.f32 %v676_v35, 0.0  ;;  %v1338_v25 = vadd.f32 %v1306_v12, %v1241_v4  ;;  %v2756_v35 = vld [vmem:[%s3718_s5] ss:$0 sm:$0xff]  ;;  %v1049_v3 = vadd.f32 %v1017_v50, %v952_v39 }
  0xae   : > { %v2716_v49 = vld [vmem:[#allocation2 + $0x30] sm:$0xff] }
  0xaf   : > { %787 = vst.msk [vmem:[#allocation2 + $0x39] sm:$0xff] %vm737_vm2, %v708_v42  ;;  %v1403_v52 = vmul.f32 %v2710_v41, %v2716_v49  ;;  %v2728_v62 = vld [vmem:[#allocation2 + $0x31] sm:$0xff]  ;;  %v1113_v24 = vmul.f32 %v2716_v49, %v2691_v11 }
  0xb0   : > { %v563_v54 = vpop.f32.mrf.mxu0  ;;  %v1500_v17 = vmul.f32 %v2725_v59, %v2728_v62  ;;  %v1210_v61 = vmul.f32 %v2728_v62, %v2702_v27 }
  0xb1   : > { %v641_v55 = vmul.f32 %v2597_v29, %v563_v54  ;;  %v1435_v5 = vadd.f32 %v1403_v52, %v1337_v57  ;;  %v1145_v52 = vadd.f32 %v1113_v24, %v1048_v40  ;;  %v856_v40 = vmul.f32 %v2716_v49, %v2652_v45 }
  0xb3   : > { %v677_v7 = vadd.f32 %v2606_v30, %v641_v55  ;;  %2310 = vmatmul.msk.bf16.gmra.mxu0 %vm491_vm1, %v2714_v46  ;;  %v1532_v33 = vadd.f32 %v1500_v17, %v1435_v5  ;;  %v464_v55 = vld [vmem:[%s2490_s15 + $0xb0] sm:$0xff]  ;;  %v1242_v14 = vadd.f32 %v1210_v61, %v1145_v52 }
  0xb4   : > { %v2778_v8 = vpack.c.bf16 %v465_v56, %v464_v55  ;;  %2350 = vmatmul.msk.bf16.gmra.mxu2 %vm491_vm1, %v2714_v46 }
  0xb5   : > { %v709_v15 = vmax.f32 %v677_v7, 0.0 }
  0xb6   : > { %v1371_v18 = vld [vmem:[#allocation2 + $0x38] sm:$0xff] }
  0xb7   : > { %v1468_v20 = vld [vmem:[#allocation2 + $0x39] sm:$0xff]  ;;  %788 = vst.msk [vmem:[#allocation2 + $0x49] sm:$0xff] %vm737_vm2, %v709_v15  ;;  %v1404_v32 = vmul.f32 %v2710_v41, %v1371_v18  ;;  %v1114_v51 = vmul.f32 %v1371_v18, %v2691_v11 }
  0xb8   : > { %v1564_v21 = vld [vmem:[#allocation2 + $0x32] sm:$0xff]  ;;  %v565_v37 = vpop.f32.mrf.mxu0  ;;  %v2758_v38 = vld [vmem:[#allocation2 + $0x3a] sm:$0xff]  ;;  %v1501_v44 = vmul.f32 %v2725_v59, %v1468_v20  ;;  %v922_v52 = vmul.f32 %v1468_v20, %v2654_v47 }
  0xb9   : > { %v1597_v34 = vmul.f32 %v2730_v63, %v1564_v21  ;;  %v642_v42 = vmul.f32 %v2597_v29, %v565_v37  ;;  %v1436_v43 = vadd.f32 %v1404_v32, %v1338_v25  ;;  %v1598_v60 = vmul.f32 %v2730_v63, %v2758_v38 }
  0xba   : > { %v1307_v5 = vmul.f32 %v1564_v21, %v2704_v28  ;;  %v1146_v9 = vadd.f32 %v1114_v51, %v1049_v3  ;;  %v1211_v25 = vmul.f32 %v1468_v20, %v2702_v27  ;;  %v1308_v50 = vmul.f32 %v2758_v38, %v2704_v28 }
  0xbb   : > { %v1629_v48 = vadd.f32 %v1597_v34, %v1532_v33  ;;  %v678_v54 = vadd.f32 %v2606_v30, %v642_v42  ;;  %v1533_v57 = vadd.f32 %v1501_v44, %v1436_v43  ;;  %v921_v42 = vmul.f32 %v2728_v62, %v2654_v47 }
  0xbc   : > { %v1339_v34 = vadd.f32 %v1307_v5, %v1242_v14  ;;  %v1243_v37 = vadd.f32 %v1211_v25, %v1146_v9  ;;  %v857_v51 = vmul.f32 %v1371_v18, %v2652_v45  ;;  %v1018_v49 = vmul.f32 %v1564_v21, %v2672_v58 }
  0xbd   : > { %v1665_v0 = vmul.f32 %v2756_v35, %v1629_v48  ;;  %v710_v7 = vmax.f32 %v678_v54, 0.0  ;;  %v1630_v4 = vadd.f32 %v1598_v60, %v1533_v57  ;;  %v953_v3 = vadd.f32 %v921_v42, %v856_v40 }
  0xbe   : > { %v2780_v15 = vld [vmem:[#allocation2 + $0x48] sm:$0xff]  ;;  %v1340_v56 = vadd.f32 %v1308_v50, %v1243_v37  ;;  %v954_v5 = vadd.f32 %v922_v52, %v857_v51 }
  0xbf   : > { %789 = vst.msk [vmem:[#allocation2 + $0x51] sm:$0xff] %vm737_vm2, %v710_v7  ;;  %v1666_v12 = vmul.f32 %v2756_v35, %v1630_v4  ;;  %v1701_v17 = vadd.f32 %v2773_v2, %v1665_v0  ;;  %v1405_v23 = vmul.f32 %v2710_v41, %v2780_v15  ;;  %v2792_v39 = vld [vmem:[#allocation2 + $0x49] sm:$0xff]  ;;  %v1115_v61 = vmul.f32 %v2780_v15, %v2691_v11 }
  0xc0   : > { %v568_v24 = vpop.f32.mrf.mxu0  ;;  %v1502_v62 = vmul.f32 %v2725_v59, %v2792_v39  ;;  %v1050_v9 = vadd.f32 %v1018_v49, %v953_v3  ;;  %v467_v37 = vld [vmem:[%s2490_s15 + $0xc8] sm:$0xff] }
  0xc1   : > { %v643_v32 = vmul.f32 %v2597_v29, %v568_v24  ;;  %v1702_v33 = vadd.f32 %v2773_v2, %v1666_v12  ;;  %v1733_v10 = vmax.f32 %v1701_v17, 0.0  ;;  %v1437_v48 = vadd.f32 %v1405_v23, %v1339_v34  ;;  %v466_v34 = vld [vmem:[%s2490_s15 + $0xc0] sm:$0xff] }
  0xc2   : > { %v1019_v24 = vmul.f32 %v2758_v38, %v2672_v58  ;;  %v2830_v51 = vpack.c.bf16 %v467_v37, %v466_v34 }
  0xc3   : > { %v679_v43 = vadd.f32 %v2606_v30, %v643_v32  ;;  %2311 = vmatmul.msk.bf16.gmra.mxu0 %vm491_vm1, %v2778_v8  ;;  %v1734_v44 = vmax.f32 %v1702_v33, 0.0  ;;  %v1534_v20 = vadd.f32 %v1502_v62, %v1437_v48  ;;  %v1147_v32 = vadd.f32 %v1115_v61, %v1050_v9 }
  0xc4   : > { %v858_v9 = vmul.f32 %v2780_v15, %v2652_v45  ;;  %2351 = vmatmul.msk.bf16.gmra.mxu2 %vm491_vm1, %v2778_v8 }
  0xc5   : > { %v711_v54 = vmax.f32 %v679_v43, 0.0  ;;  %v1765_v55 = vpack.c.bf16 %v1734_v44, %v1733_v10  ;;  %v1051_v10 = vadd.f32 %v1019_v24, %v954_v5  ;;  %v1212_v44 = vmul.f32 %v2792_v39, %v2702_v27 }
  0xc6   : > { %v1373_v57 = vld [vmem:[#allocation2 + $0x50] sm:$0xff] }
  0xc7   : > { %v1470_v60 = vld [vmem:[#allocation2 + $0x51] sm:$0xff]  ;;  %790 = vst.msk [vmem:[#allocation2 + $0x61] sm:$0xff] %vm737_vm2, %v711_v54  ;;  %2324 = vmatmul.msk.bf16.vlgmr.msra.gmra.mxu1 %vm737_vm2, %v1765_v55  ;;  %v1406_v18 = vmul.f32 %v2710_v41, %v1373_v57  ;;  %v1116_v25 = vmul.f32 %v1373_v57, %v2691_v11  ;;  %v1244_v49 = vadd.f32 %v1212_v44, %v1147_v32 }
  0xc8   : > { %v1566_v0 = vld [vmem:[#allocation2 + $0x4a] sm:$0xff]  ;;  %v570_v7 = vpop.f32.mrf.mxu0  ;;  %v2814_v4 = vld [vmem:[#allocation2 + $0x52] sm:$0xff]  ;;  %v1503_v17 = vmul.f32 %v2725_v59, %v1470_v60  ;;  %v1213_v61 = vmul.f32 %v1470_v60, %v2702_v27  ;;  %v924_v32 = vmul.f32 %v1470_v60, %v2654_v47 }
  0xc9   : > { %v1599_v21 = vmul.f32 %v2730_v63, %v1566_v0  ;;  %v644_v14 = vmul.f32 %v2597_v29, %v570_v7  ;;  %v1438_v12 = vadd.f32 %v1406_v18, %v1340_v56  ;;  %v1600_v42 = vmul.f32 %v2730_v63, %v2814_v4 }
  0xca   : > { %v1309_v38 = vmul.f32 %v1566_v0, %v2704_v28  ;;  %v1148_v52 = vadd.f32 %v1116_v25, %v1051_v10  ;;  %v1310_v24 = vmul.f32 %v2814_v4, %v2704_v28  ;;  %v859_v25 = vmul.f32 %v1373_v57, %v2652_v45 }
  0xcb   : > { %v1631_v23 = vadd.f32 %v1599_v21, %v1534_v20  ;;  %v680_v33 = vadd.f32 %v2606_v30, %v644_v14  ;;  %v1535_v40 = vadd.f32 %v1503_v17, %v1438_v12  ;;  %v923_v14 = vmul.f32 %v2792_v39, %v2654_v47 }
  0xcc   : > { %v1341_v21 = vadd.f32 %v1309_v38, %v1244_v49  ;;  %v1245_v7 = vadd.f32 %v1213_v61, %v1148_v52  ;;  %v1020_v15 = vmul.f32 %v1566_v0, %v2672_v58  ;;  %v956_v38 = vadd.f32 %v924_v32, %v859_v25 }
  0xcd   : > { %v1667_v43 = vmul.f32 %v2756_v35, %v1631_v23  ;;  %v712_v48 = vmax.f32 %v680_v33, 0.0  ;;  %v1632_v50 = vadd.f32 %v1600_v42, %v1535_v40  ;;  %v955_v10 = vadd.f32 %v923_v14, %v858_v9 }
  0xce   : > { %v2832_v54 = vld [vmem:[#allocation2 + $0x60] sm:$0xff]  ;;  %v1342_v37 = vadd.f32 %v1310_v24, %v1245_v7 }
  0xcf   : > { %791 = vst.msk [vmem:[#allocation2 + $0x69] sm:$0xff] %vm737_vm2, %v712_v48  ;;  %v1668_v55 = vmul.f32 %v2756_v35, %v1632_v50  ;;  %v1703_v62 = vadd.f32 %v2773_v2, %v1667_v43  ;;  %v1407_v56 = vmul.f32 %v2710_v41, %v2832_v54  ;;  %v1471_v5 = vld [vmem:[#allocation2 + $0x61] sm:$0xff]  ;;  %v1117_v44 = vmul.f32 %v2832_v54, %v2691_v11 }
  0xd0   : > { %v573_v3 = vpop.f32.mrf.mxu0  ;;  %v1504_v39 = vmul.f32 %v2725_v59, %v1471_v5  ;;  %v1052_v52 = vadd.f32 %v1020_v15, %v955_v10 }
  0xd1   : > { %v645_v18 = vmul.f32 %v2597_v29, %v573_v3  ;;  %v1704_v20 = vadd.f32 %v2773_v2, %v1668_v55  ;;  %v1735_v13 = vmax.f32 %v1703_v62, 0.0  ;;  %v1439_v23 = vadd.f32 %v1407_v56, %v1341_v21 }
  0xd2   : > { %v1021_v3 = vmul.f32 %v2814_v4, %v2672_v58 }
  0xd3   : > { %v681_v12 = vadd.f32 %v2606_v30, %v645_v18  ;;  %2312 = vmatmul.msk.bf16.gmra.mxu0 %vm491_vm1, %v2830_v51  ;;  %v1736_v17 = vmax.f32 %v1704_v20, 0.0  ;;  %v1536_v60 = vadd.f32 %v1504_v39, %v1439_v23  ;;  %v1149_v18 = vadd.f32 %v1117_v44, %v1052_v52 }
  0xd4   : > { %v1053_v14 = vadd.f32 %v1021_v3, %v956_v38 }
  0xd5   : > { %v713_v33 = vmax.f32 %v681_v12, 0.0  ;;  %v1766_v34 = vpack.c.bf16 %v1736_v17, %v1735_v13  ;;  %v1214_v12 = vmul.f32 %v1471_v5, %v2702_v27 }
  0xd6   : > { %v1375_v40 = vld [vmem:[#allocation2 + $0x68] sm:$0xff] }
  0xd7   : > { %v1472_v42 = vld [vmem:[#allocation2 + $0x69] sm:$0xff]  ;;  %792 = vst.msk [vmem:[#allocation2 + $0x79] sm:$0xff] %vm737_vm2, %v713_v33  ;;  %2325 = vmatmul.msk.bf16.gmra.mxu1 %vm737_vm2, %v1766_v34  ;;  %v1408_v57 = vmul.f32 %v2710_v41, %v1375_v40  ;;  %v1118_v61 = vmul.f32 %v1375_v40, %v2691_v11  ;;  %v1246_v4 = vadd.f32 %v1214_v12, %v1149_v18 }
  0xd8   : > { %v1568_v43 = vld [vmem:[#allocation2 + $0x62] sm:$0xff]  ;;  %v575_v48 = vpop.f32.mrf.mxu0  ;;  %v2863_v50 = vld [vmem:[#allocation2 + $0x6a] sm:$0xff]  ;;  %v1505_v62 = vmul.f32 %v2725_v59, %v1472_v42  ;;  %v1215_v39 = vmul.f32 %v1472_v42, %v2702_v27 }
  0xd9   : > { %v1601_v0 = vmul.f32 %v2730_v63, %v1568_v43  ;;  %v646_v49 = vmul.f32 %v2597_v29, %v575_v48  ;;  %v1440_v55 = vadd.f32 %v1408_v57, %v1342_v37  ;;  %v1602_v7 = vmul.f32 %v2730_v63, %v2863_v50 }
  0xda   : > { %v1311_v23 = vmul.f32 %v1568_v43, %v2704_v28  ;;  %v1150_v24 = vadd.f32 %v1118_v61, %v1053_v14  ;;  %v925_v48 = vmul.f32 %v1471_v5, %v2654_v47  ;;  %v1022_v3 = vmul.f32 %v1568_v43, %v2672_v58 }
  0xdb   : > { %v1633_v56 = vadd.f32 %v1601_v0, %v1536_v60  ;;  %v682_v20 = vadd.f32 %v2606_v30, %v646_v49  ;;  %v1537_v21 = vadd.f32 %v1505_v62, %v1440_v55  ;;  %v860_v0 = vmul.f32 %v2832_v54, %v2652_v45 }
  0xdc   : > { %v1343_v44 = vadd.f32 %v1311_v23, %v1246_v4  ;;  %v1247_v57 = vadd.f32 %v1215_v39, %v1150_v24  ;;  %v1312_v55 = vmul.f32 %v2863_v50, %v2704_v28  ;;  %v861_v62 = vmul.f32 %v1375_v40, %v2652_v45 }
  0xdd   : > { %v1669_v9 = vmul.f32 %v2756_v35, %v1633_v56  ;;  %v714_v13 = vmax.f32 %v682_v20, 0.0  ;;  %v1634_v17 = vadd.f32 %v1602_v7, %v1537_v21  ;;  %v926_v56 = vmul.f32 %v1472_v42, %v2654_v47 }
  0xde   : > { %v2876_v25 = vld [vmem:[#allocation2 + $0x78] sm:$0xff]  ;;  %v1344_v20 = vadd.f32 %v1312_v55, %v1247_v57 }
  0xdf   : > { %793 = vst.msk [vmem:[#allocation2 + $0x81] sm:$0xff] %vm737_vm2, %v714_v13  ;;  %v1670_v32 = vmul.f32 %v2756_v35, %v1634_v17  ;;  %v1705_v15 = vadd.f32 %v2773_v2, %v1669_v9  ;;  %v1409_v33 = vmul.f32 %v2710_v41, %v2876_v25  ;;  %v1473_v60 = vld [vmem:[#allocation2 + $0x79] sm:$0xff]  ;;  %v957_v9 = vadd.f32 %v925_v48, %v860_v0 }
  0xe0   : > { %v578_v34 = vpop.f32.mrf.mxu0  ;;  %v1506_v54 = vmul.f32 %v2725_v59, %v1473_v60  ;;  %v1119_v14 = vmul.f32 %v2876_v25, %v2691_v11  ;;  %v958_v17 = vadd.f32 %v926_v56, %v861_v62  ;;  %v1216_v48 = vmul.f32 %v1473_v60, %v2702_v27 }
  0xe1   : > { %v647_v37 = vmul.f32 %v2597_v29, %v578_v34  ;;  %v1706_v10 = vadd.f32 %v2773_v2, %v1670_v32  ;;  %v1737_v52 = vmax.f32 %v1705_v15, 0.0  ;;  %v1441_v16 = vadd.f32 %v1409_v33, %v1343_v44 }
  0xe2   : > { %v1054_v23 = vadd.f32 %v1022_v3, %v957_v9  ;;  %v1023_v33 = vmul.f32 %v2863_v50, %v2672_v58 }
  0xe3   : > { %v683_v38 = vadd.f32 %v2606_v30, %v647_v37  ;;  %v1738_v49 = vmax.f32 %v1706_v10, 0.0  ;;  %v1538_v42 = vadd.f32 %v1506_v54, %v1441_v16 }
  0xe4   : > { %v1151_v39 = vadd.f32 %v1119_v14, %v1054_v23  ;;  %v1055_v0 = vadd.f32 %v1023_v33, %v958_v17 }
  0xe5   : > { %v715_v61 = vmax.f32 %v683_v38, 0.0  ;;  %v1767_v18 = vpack.c.bf16 %v1738_v49, %v1737_v52 }
  0xe6   : > { %v1377_v5 = vld [vmem:[#allocation2 + $0x80] sm:$0xff]  ;;  %v1248_v50 = vadd.f32 %v1216_v48, %v1151_v39 }
  0xe7   : > { %v1474_v21 = vld [vmem:[#allocation2 + $0x81] sm:$0xff]  ;;  %794 = vst.msk [vmem:[#allocation2 + $0x91] sm:$0xff] %vm737_vm2, %v715_v61  ;;  %2326 = vmatmul.msk.bf16.gmra.mxu1 %vm737_vm2, %v1767_v18  ;;  %v1410_v40 = vmul.f32 %v2710_v41, %v1377_v5  ;;  %v1120_v34 = vmul.f32 %v1377_v5, %v2691_v11 }
  0xe8   : > { %v1570_v7 = vld [vmem:[#allocation2 + $0x7a] sm:$0xff]  ;;  %v580_v12 = vpop.f32.mrf.mxu0  ;;  %v2904_v13 = vld [vmem:[#allocation2 + $0x82] sm:$0xff]  ;;  %v1507_v32 = vmul.f32 %v2725_v59, %v1474_v21  ;;  %v1217_v18 = vmul.f32 %v1474_v21, %v2702_v27 }
  0xe9   : > { %v1603_v43 = vmul.f32 %v2730_v63, %v1570_v7  ;;  %v648_v24 = vmul.f32 %v2597_v29, %v580_v12  ;;  %v1442_v4 = vadd.f32 %v1410_v40, %v1344_v20  ;;  %v1604_v44 = vmul.f32 %v2730_v63, %v2904_v13 }
  0xea   : > { %v1313_v49 = vmul.f32 %v1570_v7, %v2704_v28  ;;  %v1152_v16 = vadd.f32 %v1120_v34, %v1055_v0 }
  0xeb   : > { %v1635_v15 = vadd.f32 %v1603_v43, %v1538_v42  ;;  %v684_v37 = vadd.f32 %v2606_v30, %v648_v24  ;;  %v1539_v10 = vadd.f32 %v1507_v32, %v1442_v4  ;;  %v862_v42 = vmul.f32 %v2876_v25, %v2652_v45 }
  0xec   : > { %v1345_v9 = vadd.f32 %v1313_v49, %v1248_v50  ;;  %v1249_v14 = vadd.f32 %v1217_v18, %v1152_v16  ;;  %v927_v43 = vmul.f32 %v1473_v60, %v2654_v47  ;;  %v1314_v24 = vmul.f32 %v2904_v13, %v2704_v28 }
  0xed   : > { %v1671_v57 = vmul.f32 %v2756_v35, %v1635_v15  ;;  %v716_v38 = vmax.f32 %v684_v37, 0.0  ;;  %v1636_v52 = vadd.f32 %v1604_v44, %v1539_v10  ;;  %v863_v4 = vmul.f32 %v1377_v5, %v2652_v45 }
  0xee   : > { %v2917_v55 = vld [vmem:[#allocation2 + $0x90] sm:$0xff]  ;;  %v928_v32 = vmul.f32 %v1474_v21, %v2654_v47  ;;  %v1024_v15 = vmul.f32 %v1570_v7, %v2672_v58  ;;  %v1346_v39 = vadd.f32 %v1314_v24, %v1249_v14  ;;  %v959_v44 = vadd.f32 %v927_v43, %v862_v42 }
  0xef   : > { %795 = vst.msk [vmem:[#allocation2 + $0x99] sm:$0xff] %vm737_vm2, %v716_v38  ;;  %v1672_v62 = vmul.f32 %v2756_v35, %v1636_v52  ;;  %v1707_v56 = vadd.f32 %v2773_v2, %v1671_v57  ;;  %v1411_v3 = vmul.f32 %v2710_v41, %v2917_v55  ;;  %v1475_v40 = vld [vmem:[#allocation2 + $0x91] sm:$0xff]  ;;  %v1121_v57 = vmul.f32 %v2917_v55, %v2691_v11 }
  0xf0   : > { %v583_v61 = vpop.f32.mrf.mxu0  ;;  %v1508_v25 = vmul.f32 %v2725_v59, %v1475_v40  ;;  %v960_v38 = vadd.f32 %v928_v32, %v863_v4  ;;  %v1056_v52 = vadd.f32 %v1024_v15, %v959_v44  ;;  %v1218_v42 = vmul.f32 %v1475_v40, %v2702_v27 }
  0xf1   : > { %v649_v54 = vmul.f32 %v2597_v29, %v583_v61  ;;  %v1708_v20 = vadd.f32 %v2773_v2, %v1672_v62  ;;  %v1739_v17 = vmax.f32 %v1707_v56, 0.0  ;;  %v1443_v19 = vadd.f32 %v1411_v3, %v1345_v9 }
  0xf2   : > { %v1025_v56 = vmul.f32 %v2904_v13, %v2672_v58  ;;  %v1153_v61 = vadd.f32 %v1121_v57, %v1056_v52 }
  0xf3   : > { %v685_v12 = vadd.f32 %v2606_v30, %v649_v54  ;;  %v1740_v23 = vmax.f32 %v1708_v20, 0.0  ;;  %v1540_v21 = vadd.f32 %v1508_v25, %v1443_v19 }
  0xf4   : > { %v1057_v14 = vadd.f32 %v1025_v56, %v960_v38  ;;  %v1250_v13 = vadd.f32 %v1218_v42, %v1153_v61 }
  0xf5   : > { %v717_v33 = vmax.f32 %v685_v12, 0.0  ;;  %v1768_v34 = vpack.c.bf16 %v1740_v23, %v1739_v17 }
  0xf6   : > { %v1379_v60 = vld [vmem:[#allocation2 + $0x98] sm:$0xff] }
  0xf7   : > { %v1476_v37 = vld [vmem:[#allocation2 + $0x99] sm:$0xff]  ;;  %796 = vst.msk [vmem:[#allocation2 + $0xa9] sm:$0xff] %vm737_vm2, %v717_v33  ;;  %2327 = vmatmul.msk.bf16.gmra.mxu1 %vm737_vm2, %v1768_v34  ;;  %v1412_v5 = vmul.f32 %v2710_v41, %v1379_v60  ;;  %v1122_v3 = vmul.f32 %v1379_v60, %v2691_v11 }
  0xf8   : > { %v1572_v10 = vld [vmem:[#allocation2 + $0x92] sm:$0xff]  ;;  %v585_v0 = vpop.f32.mrf.mxu0  ;;  %v2945_v48 = vld [vmem:[#allocation2 + $0x9a] sm:$0xff]  ;;  %v1509_v50 = vmul.f32 %v2725_v59, %v1476_v37  ;;  %v1219_v33 = vmul.f32 %v1476_v37, %v2702_v27 }
  0xf9   : > { %v1605_v7 = vmul.f32 %v2730_v63, %v1572_v10  ;;  %v650_v49 = vmul.f32 %v2597_v29, %v585_v0  ;;  %v1444_v16 = vadd.f32 %v1412_v5, %v1346_v39  ;;  %v1606_v20 = vmul.f32 %v2730_v63, %v2945_v48 }
  0xfa   : > { %v1315_v17 = vmul.f32 %v1572_v10, %v2704_v28  ;;  %v1154_v23 = vadd.f32 %v1122_v3, %v1057_v14  ;;  %v864_v5 = vmul.f32 %v2917_v55, %v2652_v45  ;;  %v1316_v52 = vmul.f32 %v2945_v48, %v2704_v28 }
  0xfb   : > { %v1637_v62 = vadd.f32 %v1605_v7, %v1540_v21  ;;  %v686_v18 = vadd.f32 %v2606_v30, %v650_v49  ;;  %v1541_v54 = vadd.f32 %v1509_v50, %v1444_v16  ;;  %v929_v21 = vmul.f32 %v1475_v40, %v2654_v47 }
  0xfc   : > { %v1347_v39 = vadd.f32 %v1315_v17, %v1250_v13  ;;  %v1251_v44 = vadd.f32 %v1219_v33, %v1154_v23  ;;  %v865_v49 = vmul.f32 %v1379_v60, %v2652_v45  ;;  %v930_v16 = vmul.f32 %v1476_v37, %v2654_v47 }
  0xfd   : > { %v1673_v9 = vmul.f32 %v2756_v35, %v1637_v62  ;;  %v718_v43 = vmax.f32 %v686_v18, 0.0  ;;  %v1638_v12 = vadd.f32 %v1606_v20, %v1541_v54  ;;  %v1026_v50 = vmul.f32 %v1572_v10, %v2672_v58 }
  0xfe   : > { %v2958_v19 = vld [vmem:[#allocation2 + $0xa8] sm:$0xff]  ;;  %v1348_v3 = vadd.f32 %v1316_v52, %v1251_v44  ;;  %v961_v54 = vadd.f32 %v929_v21, %v864_v5  ;;  %v962_v42 = vadd.f32 %v930_v16, %v865_v49 }
  0xff   : > { %797 = vst.msk [vmem:[#allocation2 + $0xb1] sm:$0xff] %vm737_vm2, %v718_v43  ;;  %v1674_v24 = vmul.f32 %v2756_v35, %v1638_v12  ;;  %v1709_v4 = vadd.f32 %v2773_v2, %v1673_v9  ;;  %v1413_v32 = vmul.f32 %v2710_v41, %v2958_v19  ;;  %v1477_v57 = vld [vmem:[#allocation2 + $0xa9] sm:$0xff]  ;;  %v1123_v20 = vmul.f32 %v2958_v19, %v2691_v11 }
 0x100   : > { %v588_v15 = vpop.f32.mrf.mxu0  ;;  %v1510_v55 = vmul.f32 %v2725_v59, %v1477_v57  ;;  %v1058_v43 = vadd.f32 %v1026_v50, %v961_v54  ;;  %v1220_v44 = vmul.f32 %v1477_v57, %v2702_v27 }
 0x101   : > { %v651_v34 = vmul.f32 %v2597_v29, %v588_v15  ;;  %v1710_v25 = vadd.f32 %v2773_v2, %v1674_v24  ;;  %v1741_v0 = vmax.f32 %v1709_v4, 0.0  ;;  %v1445_v22 = vadd.f32 %v1413_v32, %v1347_v39 }
 0x102   : > { %v1027_v24 = vmul.f32 %v2945_v48, %v2672_v58  ;;  %v1155_v32 = vadd.f32 %v1123_v20, %v1058_v43  ;;  %v866_v20 = vmul.f32 %v2958_v19, %v2652_v45 }
 0x103   : > { %v687_v7 = vadd.f32 %v2606_v30, %v651_v34  ;;  %v1742_v38 = vmax.f32 %v1710_v25, 0.0  ;;  %v1542_v37 = vadd.f32 %v1510_v55, %v1445_v22 }
 0x104   : > { %v1059_v39 = vadd.f32 %v1027_v24, %v962_v42  ;;  %v1252_v48 = vadd.f32 %v1220_v44, %v1155_v32 }
 0x105   : > { %v719_v62 = vmax.f32 %v687_v7, 0.0  ;;  %v1769_v56 = vpack.c.bf16 %v1742_v38, %v1741_v0 }
 0x106   : > { %v1381_v40 = vld [vmem:[#allocation2 + $0xb0] sm:$0xff] }
 0x107   : > { %v1478_v61 = vld [vmem:[#allocation2 + $0xb1] sm:$0xff]  ;;  %798 = vst.msk [vmem:[#allocation2 + $0xc1] sm:$0xff] %vm737_vm2, %v719_v62  ;;  %2328 = vmatmul.msk.bf16.gmra.mxu1 %vm737_vm2, %v1769_v56  ;;  %v1414_v60 = vmul.f32 %v2710_v41, %v1381_v40  ;;  %v1124_v4 = vmul.f32 %v1381_v40, %v2691_v11  ;;  %v867_v43 = vmul.f32 %v1381_v40, %v2652_v45 }
 0x108   : > { %v1574_v18 = vld [vmem:[#allocation2 + $0xaa] sm:$0xff]  ;;  %v590_v9 = vpop.f32.mrf.mxu0  ;;  %v2986_v14 = vld [vmem:[#allocation2 + $0xb2] sm:$0xff]  ;;  %v1511_v23 = vmul.f32 %v2725_v59, %v1478_v61  ;;  %v1221_v50 = vmul.f32 %v1478_v61, %v2702_v27 }
 0x109   : > { %v1607_v10 = vmul.f32 %v2730_v63, %v1574_v18  ;;  %v652_v12 = vmul.f32 %v2597_v29, %v590_v9  ;;  %v1446_v17 = vadd.f32 %v1414_v60, %v1348_v3  ;;  %v1608_v34 = vmul.f32 %v2730_v63, %v2986_v14 }
 0x10a   : > { %v1317_v7 = vmul.f32 %v1574_v18, %v2704_v28  ;;  %v1156_v0 = vadd.f32 %v1124_v4, %v1059_v39  ;;  %v931_v60 = vmul.f32 %v1477_v57, %v2654_v47  ;;  %v1318_v42 = vmul.f32 %v2986_v14, %v2704_v28 }
 0x10b   : > { %v1639_v13 = vadd.f32 %v1607_v10, %v1542_v37  ;;  %v688_v15 = vadd.f32 %v2606_v30, %v652_v12  ;;  %v1543_v33 = vadd.f32 %v1511_v23, %v1446_v17  ;;  %v932_v12 = vmul.f32 %v1478_v61, %v2654_v47 }
 0x10c   : > { %v1349_v55 = vadd.f32 %v1317_v7, %v1252_v48  ;;  %v1253_v3 = vadd.f32 %v1221_v50, %v1156_v0  ;;  %v1028_v17 = vmul.f32 %v1574_v18, %v2672_v58 }
 0x10d   : > { %v1675_v25 = vmul.f32 %v2756_v35, %v1639_v13  ;;  %v720_v5 = vmax.f32 %v688_v15, 0.0  ;;  %v1640_v21 = vadd.f32 %v1608_v34, %v1543_v33  ;;  %v963_v15 = vadd.f32 %v931_v60, %v866_v20  ;;  %v618_v34 = vpop.f32.mrf.mxu3 }
 0x10e   : > { %v2999_v38 = vld [vmem:[#allocation2 + $0xc0] sm:$0xff]  ;;  %v1350_v57 = vadd.f32 %v1318_v42, %v1253_v3  ;;  %v663_v44 = vmul.f32 %v2597_v29, %v618_v34 }
 0x10f   : > { %799 = vst.msk [vmem:[#allocation2 + $0xc9] sm:$0xff] %vm737_vm2, %v720_v5  ;;  %v1676_v22 = vmul.f32 %v2756_v35, %v1640_v21  ;;  %v1711_v52 = vadd.f32 %v2773_v2, %v1675_v25  ;;  %v1415_v49 = vmul.f32 %v2710_v41, %v2999_v38  ;;  %v3011_v54 = vld [vmem:[#allocation2 + $0xc1] sm:$0xff]  ;;  %v1125_v40 = vmul.f32 %v2999_v38, %v2691_v11 }
 0x110   : > { %v593_v16 = vpop.f32.mrf.mxu0  ;;  %v1512_v19 = vmul.f32 %v2725_v59, %v3011_v54  ;;  %v964_v5 = vadd.f32 %v932_v12, %v867_v43  ;;  %v1060_v21 = vadd.f32 %v1028_v17, %v963_v15 }
 0x111   : > { %v653_v62 = vmul.f32 %v2597_v29, %v593_v16  ;;  %v1712_v56 = vadd.f32 %v2773_v2, %v1676_v22  ;;  %v1743_v10 = vmax.f32 %v1711_v52, 0.0  ;;  %v1447_v9 = vadd.f32 %v1415_v49, %v1349_v55 }
 0x112   : > { %v699_v52 = vadd.f32 %v2606_v30, %v663_v44  ;;  %v1029_v49 = vmul.f32 %v2986_v14, %v2672_v58  ;;  %v1157_v50 = vadd.f32 %v1125_v40, %v1060_v21  ;;  %v1222_v14 = vmul.f32 %v3011_v54, %v2702_v27 }
 0x113   : > { %v689_v37 = vadd.f32 %v2606_v30, %v653_v62  ;;  %v1744_v26 = vmax.f32 %v1712_v56, 0.0  ;;  %v1544_v18 = vadd.f32 %v1512_v19, %v1447_v9  ;;  %v3052_v62 = vld [vmem:[%s3716_s3] ss:$0 sm:$0xff] }
 0x114   : > { %v731_v3 = vmax.f32 %v699_v52, 0.0  ;;  %v1061_v20 = vadd.f32 %v1029_v49, %v964_v5  ;;  %v1254_v9 = vadd.f32 %v1222_v14, %v1157_v50  ;;  %v933_v5 = vmul.f32 %v3011_v54, %v2654_v47  ;;  %v3107_v14 = vpop.f32.mrf.mxu2 }
 0x115   : > { %v721_v23 = vmax.f32 %v689_v37, 0.0  ;;  %v1770_v13 = vpack.c.bf16 %v1744_v26, %v1743_v10 }
 0x116   : > { %v3024_v24 = vld [vmem:[#allocation2 + $0xc8] sm:$0xff]  ;;  %810 = vst.msk [vmem:[#allocation2 + $0x151] sm:$0xff] %vm737_vm2, %v731_v3 }
 0x117   : > { %v3026_v4 = vld [vmem:[#allocation2 + $0xc9] sm:$0xff]  ;;  %800 = vst.msk [vmem:[#allocation2 + $0xd9] sm:$0xff] %vm737_vm2, %v721_v23  ;;  %2329 = vmatmul.msk.bf16.gmra.mxu1 %vm737_vm2, %v1770_v13  ;;  %v1416_v61 = vmul.f32 %v2710_v41, %v3024_v24  ;;  %v1126_v16 = vmul.f32 %v3024_v24, %v2691_v11  ;;  %v620_v23 = vpop.f32.mrf.mxu3 }
 0x118   : > { %v3028_v32 = vld [vmem:[#allocation2 + $0xc2] sm:$0xff]  ;;  %v595_v25 = vpop.f32.mrf.mxu0  ;;  %v3038_v39 = vld [vmem:[#allocation2 + $0xca] sm:$0xff]  ;;  %v1513_v48 = vmul.f32 %v2725_v59, %v3026_v4  ;;  %v1223_v19 = vmul.f32 %v3026_v4, %v2702_v27  ;;  %v934_v52 = vmul.f32 %v3026_v4, %v2654_v47 }
 0x119   : > { %v1609_v33 = vmul.f32 %v2730_v63, %v3028_v32  ;;  %v654_v7 = vmul.f32 %v2597_v29, %v595_v25  ;;  %v1448_v0 = vadd.f32 %v1416_v61, %v1350_v57  ;;  %v1610_v55 = vmul.f32 %v2730_v63, %v3038_v39  ;;  %v3077_v57 = vld [vmem:[%s3715_s2] ss:$0 sm:$0xff] }
 0x11a   : > { %v1319_v10 = vmul.f32 %v3028_v32, %v2704_v28  ;;  %v1158_v26 = vadd.f32 %v1126_v16, %v1061_v20  ;;  %v664_v15 = vmul.f32 %v3077_v57, %v620_v23  ;;  %v1320_v34 = vmul.f32 %v3038_v39, %v2704_v28 }
 0x11b   : > { %v1641_v22 = vadd.f32 %v1609_v33, %v1544_v18  ;;  %v690_v29 = vadd.f32 %v3052_v62, %v654_v7  ;;  %v1545_v56 = vadd.f32 %v1513_v48, %v1448_v0  ;;  %v868_v33 = vmul.f32 %v2999_v38, %v2652_v45 }
 0x11c   : > { %v1351_v18 = vadd.f32 %v1319_v10, %v1254_v9  ;;  %v1255_v31 = vadd.f32 %v1223_v19, %v1158_v26  ;;  %v700_v44 = vadd.f32 %v3052_v62, %v664_v15  ;;  %v869_v38 = vmul.f32 %v3024_v24, %v2652_v45 }
 0x11d   : > { %v1677_v30 = vmul.f32 %v2756_v35, %v1641_v22  ;;  %v722_v60 = vmax.f32 %v690_v29, 0.0  ;;  %v1642_v37 = vadd.f32 %v1610_v55, %v1545_v56  ;;  %v1030_v49 = vmul.f32 %v3028_v32, %v2672_v58 }
 0x11e   : > { %v3063_v42 = vld [vmem:[#allocation2 + $0xd8] sm:$0xff]  ;;  %v732_v22 = vmax.f32 %v700_v44, 0.0  ;;  %v1352_v29 = vadd.f32 %v1320_v34, %v1255_v31  ;;  %v965_v3 = vadd.f32 %v933_v5, %v868_v33  ;;  %v966_v10 = vadd.f32 %v934_v52, %v869_v38 }
 0x11f   : > { %801 = vst.msk [vmem:[#allocation2 + $0xe1] sm:$0xff] %vm737_vm2, %v722_v60  ;;  %v1678_v43 = vmul.f32 %v2756_v35, %v1642_v37  ;;  %v1713_v12 = vadd.f32 %v2773_v2, %v1677_v30  ;;  %v1417_v17 = vmul.f32 %v2710_v41, %v3063_v42  ;;  %v3086_v25 = vld [vmem:[#allocation2 + $0xd9] sm:$0xff]  ;;  %v1127_v24 = vmul.f32 %v3063_v42, %v2691_v11  ;;  %v623_v33 = vpop.f32.mrf.mxu3 }
 0x120   : > { %v598_v13 = vpop.f32.mrf.mxu0  ;;  %v1514_v54 = vmul.f32 %v2725_v59, %v3086_v25  ;;  %811 = vst.msk [vmem:[#allocation2 + $0x159] sm:$0xff] %vm737_vm2, %v732_v22  ;;  %v1062_v26 = vadd.f32 %v1030_v49, %v965_v3  ;;  %v1031_v23 = vmul.f32 %v3038_v39, %v2672_v58  ;;  %v1224_v34 = vmul.f32 %v3086_v25, %v2702_v27 }
 0x121   : > { %v655_v40 = vmul.f32 %v3077_v57, %v598_v13  ;;  %v1714_v61 = vadd.f32 %v2773_v2, %v1678_v43  ;;  %v1745_v7 = vmax.f32 %v1713_v12, 0.0  ;;  %v1449_v48 = vadd.f32 %v1417_v17, %v1351_v18 }
 0x122   : > { %v1159_v19 = vadd.f32 %v1127_v24, %v1062_v26  ;;  %v1063_v31 = vadd.f32 %v1031_v23, %v966_v10  ;;  %v665_v39 = vmul.f32 %v3077_v57, %v623_v33  ;;  %v870_v38 = vmul.f32 %v3063_v42, %v2652_v45 }
 0x123   : > { %v691_v21 = vadd.f32 %v3052_v62, %v655_v40  ;;  %v1746_v0 = vmax.f32 %v1714_v61, 0.0  ;;  %v1546_v32 = vadd.f32 %v1514_v54, %v1449_v48  ;;  %v935_v42 = vmul.f32 %v3086_v25, %v2654_v47 }
 0x124   : > { %v1256_v48 = vadd.f32 %v1224_v34, %v1159_v19  ;;  %v701_v49 = vadd.f32 %v3052_v62, %v665_v39 }
 0x125   : > { %v723_v16 = vmax.f32 %v691_v21, 0.0  ;;  %v1771_v50 = vpack.c.bf16 %v1746_v0, %v1745_v7 }
 0x126   : > { %v1385_v56 = vld [vmem:[#allocation2 + $0xe0] sm:$0xff] }
 0x127   : > { %v1482_v55 = vld [vmem:[#allocation2 + $0xe1] sm:$0xff]  ;;  %802 = vst.msk [vmem:[#allocation2 + $0xf1] sm:$0xff] %vm737_vm2, %v723_v16  ;;  %2330 = vmatmul.msk.bf16.gmra.mxu1 %vm737_vm2, %v1771_v50  ;;  %v1418_v4 = vmul.f32 %v2710_v41, %v1385_v56  ;;  %v1128_v13 = vmul.f32 %v1385_v56, %v2691_v11  ;;  %v2021_v50 = vpop.f32.mrf.mxu2  ;;  %v871_v3 = vmul.f32 %v1385_v56, %v2652_v45 }
 0x128   : > { %v1578_v30 = vld [vmem:[#allocation2 + $0xda] sm:$0xff]  ;;  %v600_v60 = vpop.f32.mrf.mxu0  ;;  %v3109_v37 = vld [vmem:[#allocation2 + $0xe2] sm:$0xff]  ;;  %v1515_v12 = vmul.f32 %v2725_v59, %v1482_v55  ;;  %v936_v24 = vmul.f32 %v1482_v55, %v2654_v47  ;;  %2352 = vmatmul.msk.bf16.gmra.mxu2 %vm491_vm1, %v2830_v51 }
 0x129   : > { %v1611_v20 = vmul.f32 %v2730_v63, %v1578_v30  ;;  %v656_v9 = vmul.f32 %v3077_v57, %v600_v60  ;;  %v1450_v43 = vadd.f32 %v1418_v4, %v1352_v29  ;;  %v1612_v61 = vmul.f32 %v2730_v63, %v3109_v37 }
 0x12a   : > { %v1321_v21 = vmul.f32 %v1578_v30, %v2704_v28  ;;  %v1160_v0 = vadd.f32 %v1128_v13, %v1063_v31  ;;  %v1225_v29 = vmul.f32 %v1482_v55, %v2702_v27  ;;  %v1032_v53 = vmul.f32 %v1578_v30, %v2672_v58  ;;  %v625_v55 = vpop.f32.mrf.mxu3  ;;  %v3153_v30 = vld [vmem:[%s3724_s11] ss:$0 sm:$0xff] }
 0x12b   : > { %v1643_v17 = vadd.f32 %v1611_v20, %v1546_v32  ;;  %v692_v15 = vadd.f32 %v3052_v62, %v656_v9  ;;  %v1547_v40 = vadd.f32 %v1515_v12, %v1450_v43  ;;  %v733_v32 = vmax.f32 %v701_v49, 0.0  ;;  %3735 = vst [vmem:[#allocation6_spill] sm:$0xff] %v3153_v30 }
 0x12c   : > { %v1353_v20 = vadd.f32 %v1321_v21, %v1256_v48  ;;  %v1257_v60 = vadd.f32 %v1225_v29, %v1160_v0  ;;  %v1322_v25 = vmul.f32 %v3109_v37, %v2704_v28  ;;  %v967_v12 = vadd.f32 %v935_v42, %v870_v38 }
 0x12d   : > { %v1679_v18 = vmul.f32 %v2756_v35, %v1643_v17  ;;  %v724_v44 = vmax.f32 %v692_v15, 0.0  ;;  %v1644_v5 = vadd.f32 %v1612_v61, %v1547_v40  ;;  %812 = vst.msk [vmem:[#allocation2 + $0x169] sm:$0xff] %vm737_vm2, %v733_v32  ;;  %v968_v17 = vadd.f32 %v936_v24, %v871_v3 }
 0x12e   : > { %v3125_v22 = vld [vmem:[#allocation2 + $0xf0] sm:$0xff]  ;;  %v666_v15 = vmul.f32 %v3077_v57, %v625_v55  ;;  %v1354_v40 = vadd.f32 %v1322_v25, %v1257_v60  ;;  %v1033_v31 = vmul.f32 %v3109_v37, %v2672_v58  ;;  %v1064_v34 = vadd.f32 %v1032_v53, %v967_v12  ;;  %v3177_v60 = vld [vmem:[%s3718_s5] ss:$0 sm:$0xff] }
 0x12f   : > { %v1715_v7 = vadd.f32 %v2773_v2, %v1679_v18  ;;  %803 = vst.msk [vmem:[#allocation2 + $0xf9] sm:$0xff] %vm737_vm2, %v724_v44  ;;  %v1680_v52 = vmul.f32 %v2756_v35, %v1644_v5  ;;  %v1419_v16 = vmul.f32 %v2710_v41, %v3125_v22  ;;  %v1483_v10 = vld [vmem:[#allocation2 + $0xf1] sm:$0xff]  ;;  %v2024_v21 = vpop.f32.mrf.mxu2  ;;  %v3169_v3 = vmul.f32 %v3153_v30, %v3107_v14 }
 0x130   : > { %v603_v54 = vpop.f32.mrf.mxu0  ;;  %v1516_v19 = vmul.f32 %v2725_v59, %v1483_v10  ;;  %v702_v48 = vadd.f32 %v3052_v62, %v666_v15  ;;  %v1065_v38 = vadd.f32 %v1033_v31, %v968_v17 }
 0x131   : > { %v657_v35 = vmul.f32 %v3077_v57, %v603_v54  ;;  %v1716_v4 = vadd.f32 %v2773_v2, %v1680_v52  ;;  %v1747_v9 = vmax.f32 %v1715_v7, 0.0  ;;  %v1451_v56 = vadd.f32 %v1419_v16, %v1353_v20 }
 0x132   : > { %v1129_v2 = vmul.f32 %v3125_v22, %v2691_v11  ;;  %v734_v42 = vmax.f32 %v702_v48, 0.0  ;;  %v628_v14 = vpop.f32.mrf.mxu3 }
 0x133   : > { %v693_v26 = vadd.f32 %v3052_v62, %v657_v35  ;;  %v1748_v43 = vmax.f32 %v1716_v4, 0.0  ;;  %v1548_v5 = vadd.f32 %v1516_v19, %v1451_v56  ;;  %v1226_v35 = vmul.f32 %v1483_v10, %v2702_v27 }
 0x134   : > { %v1161_v49 = vadd.f32 %v1129_v2, %v1064_v34  ;;  %813 = vst.msk [vmem:[#allocation2 + $0x171] sm:$0xff] %vm737_vm2, %v734_v42  ;;  %v937_v56 = vmul.f32 %v1483_v10, %v2654_v47  ;;  %v667_v12 = vmul.f32 %v3077_v57, %v628_v14 }
 0x135   : > { %v725_v23 = vmax.f32 %v693_v26, 0.0  ;;  %v1772_v13 = vpack.c.bf16 %v1748_v43, %v1747_v9  ;;  %v3181_v26 = vmul.f32 %v3153_v30, %v2021_v50  ;;  %v872_v43 = vmul.f32 %v3125_v22, %v2652_v45  ;;  %v3197_v22 = vld [vmem:[%s3719_s6] ss:$0 sm:$0xff] }
 0x136   : > { %v1387_v61 = vld [vmem:[#allocation2 + $0xf8] sm:$0xff]  ;;  %v1258_v17 = vadd.f32 %v1226_v35, %v1161_v49 }
 0x137   : > { %v1484_v18 = vld [vmem:[#allocation2 + $0xf9] sm:$0xff]  ;;  %804 = vst.msk [vmem:[#allocation2 + $0x109] sm:$0xff] %vm737_vm2, %v725_v23  ;;  %2331 = vmatmul.msk.bf16.gmra.mxu1 %vm737_vm2, %v1772_v13  ;;  %v1420_v44 = vmul.f32 %v2710_v41, %v1387_v61  ;;  %v1130_v52 = vmul.f32 %v1387_v61, %v2691_v11  ;;  %v873_v13 = vmul.f32 %v1387_v61, %v2652_v45  ;;  %v2026_v31 = vpop.f32.mrf.mxu2 }
 0x138   : > { %v1580_v33 = vld [vmem:[#allocation2 + $0xf2] sm:$0xff]  ;;  %v605_v7 = vpop.f32.mrf.mxu0  ;;  %v1581_v0 = vld [vmem:[#allocation2 + $0xfa] sm:$0xff]  ;;  %v1517_v54 = vmul.f32 %v2725_v59, %v1484_v18  ;;  %v1227_v9 = vmul.f32 %v1484_v18, %v2702_v27  ;;  %v938_v19 = vmul.f32 %v1484_v18, %v2654_v47 }
 0x139   : > { %v1613_v39 = vmul.f32 %v2730_v63, %v1580_v33  ;;  %v658_v37 = vmul.f32 %v3077_v57, %v605_v7  ;;  %v1452_v16 = vadd.f32 %v1420_v44, %v1354_v40  ;;  %v1162_v24 = vadd.f32 %v1130_v52, %v1065_v38  ;;  %v3210_v7 = vld [vmem:[%s3721_s8] ss:$0 sm:$0xff] }
 0x13a   : > { %v1614_v20 = vmul.f32 %v2730_v63, %v1581_v0  ;;  %v1323_v23 = vmul.f32 %v1580_v33, %v2704_v28  ;;  %v703_v40 = vadd.f32 %v3052_v62, %v667_v12  ;;  %v1324_v18 = vmul.f32 %v1581_v0, %v2704_v28 }
 0x13b   : > { %v1645_v29 = vadd.f32 %v1613_v39, %v1548_v5  ;;  %v694_v4 = vadd.f32 %v3052_v62, %v658_v37  ;;  %v1549_v32 = vadd.f32 %v1517_v54, %v1452_v16  ;;  %v1259_v2 = vadd.f32 %v1227_v9, %v1162_v24 }
 0x13c   : > { %v969_v44 = vadd.f32 %v937_v56, %v872_v43  ;;  %v1034_v5 = vmul.f32 %v1580_v33, %v2672_v58  ;;  %v3214_v38 = vmul.f32 %v3153_v30, %v2024_v21  ;;  %v735_v46 = vmax.f32 %v703_v40, 0.0 }
 0x13d   : > { %v1681_v53 = vmul.f32 %v3177_v60, %v1645_v29  ;;  %v726_v25 = vmax.f32 %v694_v4, 0.0  ;;  %v1646_v55 = vadd.f32 %v1614_v20, %v1549_v32  ;;  %v1355_v49 = vadd.f32 %v1323_v23, %v1258_v17  ;;  %v3221_v29 = vld [vmem:[%s3722_s9] ss:$0 sm:$0xff] }
 0x13e   : > { %v1388_v50 = vld [vmem:[#allocation2 + $0x108] sm:$0xff]  ;;  %v1356_v37 = vadd.f32 %v1324_v18, %v1259_v2  ;;  %v970_v16 = vadd.f32 %v938_v19, %v873_v13  ;;  %814 = vst.msk [vmem:[#allocation2 + $0x181] sm:$0xff] %vm737_vm2, %v735_v46  ;;  %v1035_v21 = vmul.f32 %v1581_v0, %v2672_v58  ;;  %v3227_v20 = vmul.f32 %v3153_v30, %v2026_v31 }
 0x13f   : > { %805 = vst.msk [vmem:[#allocation2 + $0x111] sm:$0xff] %vm737_vm2, %v726_v25  ;;  %v1682_v15 = vmul.f32 %v3177_v60, %v1646_v55  ;;  %v1717_v10 = vadd.f32 %v3197_v22, %v1681_v53  ;;  %v1421_v34 = vmul.f32 %v2710_v41, %v1388_v50  ;;  %v1485_v52 = vld [vmem:[#allocation2 + $0x109] sm:$0xff]  ;;  %v1131_v54 = vmul.f32 %v1388_v50, %v2691_v11  ;;  %v630_v53 = vpop.f32.mrf.mxu3  ;;  %v2029_v31 = vpop.f32.mrf.mxu2 }
 0x140   : > { %v608_v61 = vpop.f32.mrf.mxu0  ;;  %v1518_v32 = vmul.f32 %v2725_v59, %v1485_v52  ;;  %v1066_v14 = vadd.f32 %v1034_v5, %v969_v44  ;;  %v668_v25 = vmul.f32 %v3077_v57, %v630_v53  ;;  %v1067_v2 = vadd.f32 %v1035_v21, %v970_v16 }
 0x141   : > { %v659_v39 = vmul.f32 %v3077_v57, %v608_v61  ;;  %v1718_v48 = vadd.f32 %v3197_v22, %v1682_v15  ;;  %v1749_v42 = vmax.f32 %v1717_v10, 0.0  ;;  %v1453_v4 = vadd.f32 %v1421_v34, %v1355_v49  ;;  %v3238_v15 = vld [vmem:[%s3725_s12] ss:$0 sm:$0xff] }
 0x142   : > { %v1163_v0 = vadd.f32 %v1131_v54, %v1066_v14  ;;  %v1228_v23 = vmul.f32 %v1485_v52, %v2702_v27  ;;  %v874_v13 = vmul.f32 %v1388_v50, %v2652_v45  ;;  %v939_v61 = vmul.f32 %v1485_v52, %v2654_v47 }
 0x143   : > { %v695_v33 = vadd.f32 %v3052_v62, %v659_v39  ;;  %v1750_v24 = vmax.f32 %v1718_v48, 0.0  ;;  %v1550_v34 = vadd.f32 %v1518_v32, %v1453_v4  ;;  %v704_v5 = vadd.f32 %v3052_v62, %v668_v25 }
 0x144   : > { %v1854_v35 = vpop.f32.mrf.mxu1  ;;  %v1260_v4 = vadd.f32 %v1228_v23, %v1163_v0 }
 0x145   : > { %v727_v9 = vmax.f32 %v695_v33, 0.0  ;;  %v1938_v43 = vmul.f32 %v3210_v7, %v1854_v35  ;;  %v1773_v56 = vpack.c.bf16 %v1750_v24, %v1749_v42  ;;  %v736_v54 = vmax.f32 %v704_v5, 0.0 }
 0x146   : > { %v1389_v55 = vld [vmem:[#allocation2 + $0x110] sm:$0xff] }
 0x147   : > { %v1486_v12 = vld [vmem:[#allocation2 + $0x111] sm:$0xff]  ;;  %806 = vst.msk [vmem:[#allocation2 + $0x121] sm:$0xff] %vm737_vm2, %v727_v9  ;;  %v1974_v19 = vadd.f32 %v3221_v29, %v1938_v43  ;;  %2332 = vmatmul.msk.bf16.gmra.mxu1 %vm737_vm2, %v1773_v56  ;;  %v1422_v10 = vmul.f32 %v2710_v41, %v1389_v55  ;;  %v1132_v49 = vmul.f32 %v1389_v55, %v2691_v11 }
 0x148   : > { %v1582_v17 = vld [vmem:[#allocation2 + $0x10a] sm:$0xff]  ;;  %v1583_v40 = vld [vmem:[#allocation2 + $0x112] sm:$0xff]  ;;  %v610_v50 = vpop.f32.mrf.mxu0  ;;  %v1519_v18 = vmul.f32 %v2725_v59, %v1486_v12  ;;  %v1229_v33 = vmul.f32 %v1486_v12, %v2702_v27  ;;  %815 = vst.msk [vmem:[#allocation2 + $0x189] sm:$0xff] %vm737_vm2, %v736_v54 }
 0x149   : > { %v1615_v44 = vmul.f32 %v2730_v63, %v1582_v17  ;;  %v2135_v39 = vadd.f32 %v3169_v3, %v1974_v19  ;;  %v660_v48 = vmul.f32 %v3077_v57, %v610_v50  ;;  %v1454_v46 = vadd.f32 %v1422_v10, %v1356_v37 }
 0x14a   : > { %v1616_v52 = vmul.f32 %v2730_v63, %v1583_v40  ;;  %v1164_v24 = vadd.f32 %v1132_v49, %v1067_v2  ;;  %v1325_v32 = vmul.f32 %v1582_v17, %v2704_v28  ;;  %v1326_v53 = vmul.f32 %v1583_v40, %v2704_v28 }
 0x14b   : > { %v1647_v16 = vadd.f32 %v1615_v44, %v1550_v34  ;;  %v2171_v3 = vadd.f32 %v3238_v15, %v2135_v39  ;;  %v696_v42 = vadd.f32 %v3052_v62, %v660_v48  ;;  %v1551_v37 = vadd.f32 %v1519_v18, %v1454_v46  ;;  %v2031_v34 = vpop.f32.mrf.mxu2 }
 0x14c   : > { %v1856_v21 = vpop.f32.mrf.mxu1  ;;  %v1261_v56 = vadd.f32 %v1229_v33, %v1164_v24  ;;  %v875_v19 = vmul.f32 %v1389_v55, %v2652_v45  ;;  %v940_v10 = vmul.f32 %v1486_v12, %v2654_v47  ;;  %v1036_v0 = vmul.f32 %v1582_v17, %v2672_v58 }
 0x14d   : > { %v1683_v35 = vmul.f32 %v3177_v60, %v1647_v16  ;;  %2204 = vst.msk [vmem:[%s3254_s28] sm:$0xff] %vm2203_vm5, %v2171_v3  ;;  %v728_v14 = vmax.f32 %v696_v42, 0.0  ;;  %v1939_v9 = vmul.f32 %v3210_v7, %v1856_v21  ;;  %v1648_v43 = vadd.f32 %v1616_v52, %v1551_v37 }
 0x14e   : > { %v1390_v2 = vld [vmem:[#allocation2 + $0x120] sm:$0xff]  ;;  %v971_v44 = vadd.f32 %v939_v61, %v874_v13  ;;  %v3276_v39 = vmul.f32 %v3153_v30, %v2029_v31  ;;  %v1357_v48 = vadd.f32 %v1325_v32, %v1260_v4  ;;  %v1358_v55 = vadd.f32 %v1326_v53, %v1261_v56 }
 0x14f   : > { %v1719_v25 = vadd.f32 %v3197_v22, %v1683_v35  ;;  %807 = vst.msk [vmem:[#allocation2 + $0x129] sm:$0xff] %vm737_vm2, %v728_v14  ;;  %v1975_v23 = vadd.f32 %v3221_v29, %v1939_v9  ;;  %v1684_v50 = vmul.f32 %v3177_v60, %v1648_v43  ;;  %v1423_v18 = vmul.f32 %v2710_v41, %v1390_v2  ;;  %v1487_v46 = vld [vmem:[#allocation2 + $0x121] sm:$0xff]  ;;  %v3297_v14 = vld [vmem:[#allocation2 + $0x150] sm:$0xff]  ;;  %v3299_v9 = vld [vmem:[#allocation2 + $0x158] sm:$0xff] }
 0x150   : > { %v613_v5 = vpop.f32.mrf.mxu0  ;;  %v1037_v12 = vmul.f32 %v1583_v40, %v2672_v58  ;;  %v972_v16 = vadd.f32 %v940_v10, %v875_v19  ;;  %v1068_v31 = vadd.f32 %v1036_v0, %v971_v44  ;;  %v1133_v54 = vmul.f32 %v1390_v2, %v2691_v11 }
 0x151   : > { %v2136_v17 = vadd.f32 %v3181_v26, %v1975_v23  ;;  %v661_v49 = vmul.f32 %v3077_v57, %v613_v5  ;;  %v1720_v52 = vadd.f32 %v3197_v22, %v1684_v50  ;;  %v1751_v13 = vmax.f32 %v1719_v25, 0.0 }
 0x152   : > { %v1455_v61 = vadd.f32 %v1423_v18, %v1357_v48  ;;  %v1520_v40 = vmul.f32 %v2725_v59, %v1487_v46  ;;  %v3289_v26 = vmul.f32 %v3153_v30, %v2031_v34  ;;  %v1165_v37 = vadd.f32 %v1133_v54, %v1068_v31 }
 0x153   : > { %v2172_v33 = vadd.f32 %v3238_v15, %v2136_v17  ;;  %v697_v3 = vadd.f32 %v3052_v62, %v661_v49  ;;  %v1752_v8 = vmax.f32 %v1720_v52, 0.0  ;;  %v876_v24 = vmul.f32 %v1390_v2, %v2652_v45  ;;  %v2034_v34 = vpop.f32.mrf.mxu2 }
 0x154   : > { %v1859_v42 = vpop.f32.mrf.mxu1  ;;  %v941_v21 = vmul.f32 %v1487_v46, %v2654_v47  ;;  %v1230_v53 = vmul.f32 %v1487_v46, %v2702_v27  ;;  %v1552_v25 = vadd.f32 %v1520_v40, %v1455_v61  ;;  %v1069_v10 = vadd.f32 %v1037_v12, %v972_v16 }
 0x155   : > { %2205 = vst.msk [vmem:[%s3254_s28 + $0x8] sm:$0xff] %vm2203_vm5, %v2172_v33  ;;  %v729_v35 = vmax.f32 %v697_v3, 0.0  ;;  %v1940_v4 = vmul.f32 %v3210_v7, %v1859_v42  ;;  %v1774_v32 = vpack.c.bf16 %v1752_v8, %v1751_v13  ;;  %v3303_v2 = vmul.f32 %v2710_v41, %v3297_v14 }
 0x156   : > { %v1391_v43 = vld [vmem:[#allocation2 + $0x128] sm:$0xff]  ;;  %v3307_v0 = vmul.f32 %v2710_v41, %v3299_v9  ;;  %v1262_v44 = vadd.f32 %v1230_v53, %v1165_v37  ;;  %v973_v17 = vadd.f32 %v941_v21, %v876_v24  ;;  %v3336_v53 = vld [vmem:[#allocation2 + $0x159] sm:$0xff] }
 0x157   : > { %v1488_v56 = vld [vmem:[#allocation2 + $0x129] sm:$0xff]  ;;  %808 = vst.msk [vmem:[#allocation2 + $0x139] sm:$0xff] %vm737_vm2, %v729_v35  ;;  %v1976_v23 = vadd.f32 %v3221_v29, %v1940_v4  ;;  %2333 = vmatmul.msk.bf16.gmra.mxu1 %vm737_vm2, %v1774_v32  ;;  %v1424_v50 = vmul.f32 %v2710_v41, %v1391_v43  ;;  %v1134_v12 = vmul.f32 %v1391_v43, %v2691_v11 }
 0x158   : > { %v1584_v19 = vld [vmem:[#allocation2 + $0x122] sm:$0xff]  ;;  %v1585_v18 = vld [vmem:[#allocation2 + $0x12a] sm:$0xff]  ;;  %v615_v5 = vpop.f32.mrf.mxu0  ;;  %v1521_v48 = vmul.f32 %v2725_v59, %v1488_v56  ;;  %v1231_v54 = vmul.f32 %v1488_v56, %v2702_v27  ;;  %v877_v42 = vmul.f32 %v1391_v43, %v2652_v45  ;;  %v942_v24 = vmul.f32 %v1488_v56, %v2654_v47 }
 0x159   : > { %v1617_v46 = vmul.f32 %v2730_v63, %v1584_v19  ;;  %v2137_v49 = vadd.f32 %v3214_v38, %v1976_v23  ;;  %v662_v52 = vmul.f32 %v3077_v57, %v615_v5  ;;  %v1456_v13 = vadd.f32 %v1424_v50, %v1358_v55  ;;  %v3324_v38 = vld [vmem:[#allocation2 + $0x151] sm:$0xff] }
 0x15a   : > { %v1618_v61 = vmul.f32 %v2730_v63, %v1585_v18  ;;  %v1166_v31 = vadd.f32 %v1134_v12, %v1069_v10  ;;  %v1327_v33 = vmul.f32 %v1584_v19, %v2704_v28  ;;  %v3330_v21 = vmul.f32 %v2725_v59, %v3324_v38 }
 0x15b   : > { %v1649_v16 = vadd.f32 %v1617_v46, %v1552_v25  ;;  %v2173_v3 = vadd.f32 %v3238_v15, %v2137_v49  ;;  %v698_v8 = vadd.f32 %v3052_v62, %v662_v52  ;;  %v1553_v40 = vadd.f32 %v1521_v48, %v1456_v13  ;;  %v3348_v12 = vpop.f32.mrf.mxu2 }
 0x15c   : > { %v1861_v57 = vpop.f32.mrf.mxu1  ;;  %v1263_v37 = vadd.f32 %v1231_v54, %v1166_v31  ;;  %v1038_v32 = vmul.f32 %v1584_v19, %v2672_v58  ;;  %v1328_v25 = vmul.f32 %v1585_v18, %v2704_v28  ;;  %v974_v56 = vadd.f32 %v942_v24, %v877_v42 }
 0x15d   : > { %v1685_v55 = vmul.f32 %v3177_v60, %v1649_v16  ;;  %2206 = vst.msk [vmem:[%s3254_s28 + $0x10] sm:$0xff] %vm2203_vm5, %v2173_v3  ;;  %v730_v35 = vmax.f32 %v698_v8, 0.0  ;;  %v1941_v62 = vmul.f32 %v3210_v7, %v1861_v57  ;;  %v1650_v4 = vadd.f32 %v1618_v61, %v1553_v40  ;;  %v3361_v3 = vld [vmem:[#allocation2 + $0x15a] sm:$0xff] }
 0x15e   : > { %v1392_v10 = vld [vmem:[#allocation2 + $0x138] sm:$0xff]  ;;  %v3342_v23 = vmul.f32 %v2725_v59, %v3336_v53  ;;  %v1359_v48 = vadd.f32 %v1327_v33, %v1262_v44  ;;  %v3351_v49 = vmul.f32 %v3153_v30, %v2034_v34  ;;  %v1360_v52 = vadd.f32 %v1328_v25, %v1263_v37 }
 0x15f   : > { %v1721_v43 = vadd.f32 %v3197_v22, %v1685_v55  ;;  %809 = vst.msk [vmem:[#allocation2 + $0x141] sm:$0xff] %vm737_vm2, %v730_v35  ;;  %v1977_v50 = vadd.f32 %v3221_v29, %v1941_v62  ;;  %v1686_v5 = vmul.f32 %v3177_v60, %v1650_v4  ;;  %v1425_v19 = vmul.f32 %v2710_v41, %v1392_v10  ;;  %v1489_v46 = vld [vmem:[#allocation2 + $0x139] sm:$0xff] }
 0x160   : > { %v1039_v13 = vmul.f32 %v1585_v18, %v2672_v58  ;;  %v1070_v61 = vadd.f32 %v1038_v32, %v973_v17  ;;  %v1135_v54 = vmul.f32 %v1392_v10, %v2691_v11  ;;  %v3359_v33 = vld [vmem:[#allocation2 + $0x152] sm:$0xff]  ;;  %v1522_v8 = vmul.f32 %v2725_v59, %v1489_v46 }
 0x161   : > { %v2138_v16 = vadd.f32 %v3227_v20, %v1977_v50  ;;  %v1722_v31 = vadd.f32 %v3197_v22, %v1686_v5  ;;  %v1457_v44 = vadd.f32 %v1425_v19, %v1359_v48  ;;  %v1753_v34 = vmax.f32 %v1721_v43, 0.0 }
 0x162   : > { %v1071_v18 = vadd.f32 %v1039_v13, %v974_v56  ;;  %v878_v17 = vmul.f32 %v1392_v10, %v2652_v45  ;;  %v1167_v20 = vadd.f32 %v1135_v54, %v1070_v61  ;;  %v1232_v42 = vmul.f32 %v1489_v46, %v2702_v27 }
 0x163   : > { %v2174_v51 = vadd.f32 %v3238_v15, %v2138_v16  ;;  %v1754_v40 = vmax.f32 %v1722_v31, 0.0  ;;  %v1554_v55 = vadd.f32 %v1522_v8, %v1457_v44  ;;  %v1621_v37 = vmul.f32 %v2730_v63, %v3359_v33  ;;  %v3389_v31 = vpop.f32.mrf.mxu2 }
 0x164   : > { %v1864_v57 = vpop.f32.mrf.mxu1  ;;  %v3371_v24 = vmul.f32 %v2730_v63, %v3361_v3  ;;  %v943_v35 = vmul.f32 %v1489_v46, %v2654_v47  ;;  %v1137_v32 = vmul.f32 %v3297_v14, %v2691_v11  ;;  %v1138_v43 = vmul.f32 %v3299_v9, %v2691_v11  ;;  %3736 = vst [vmem:[#allocation7_spill] sm:$0xff] %v3389_v31 }
 0x165   : > { %2207 = vst.msk [vmem:[%s3254_s28 + $0x18] sm:$0xff] %vm2203_vm5, %v2174_v51  ;;  %v1942_v62 = vmul.f32 %v3210_v7, %v1864_v57  ;;  %v1775_v4 = vpack.c.bf16 %v1754_v40, %v1753_v34  ;;  %v1264_v50 = vadd.f32 %v1232_v42, %v1167_v20  ;;  %v1234_v48 = vmul.f32 %v3324_v38, %v2702_v27 }
 0x166   : > { %v1393_v25 = vld [vmem:[#allocation2 + $0x140] sm:$0xff]  ;;  %v975_v5 = vadd.f32 %v943_v35, %v878_v17  ;;  %v1235_v19 = vmul.f32 %v3336_v53, %v2702_v27  ;;  %v1331_v44 = vmul.f32 %v3359_v33, %v2704_v28 }
 0x167   : > { %v1490_v10 = vld [vmem:[#allocation2 + $0x141] sm:$0xff]  ;;  %v1978_v46 = vadd.f32 %v3221_v29, %v1942_v62  ;;  %2334 = vmatmul.msk.bf16.gmra.mxu1 %vm737_vm2, %v1775_v4  ;;  %v1426_v13 = vmul.f32 %v2710_v41, %v1393_v25  ;;  %v1136_v8 = vmul.f32 %v1393_v25, %v2691_v11  ;;  %v879_v4 = vmul.f32 %v1393_v25, %v2652_v45 }
 0x168   : > { %v1586_v56 = vld [vmem:[#allocation2 + $0x13a] sm:$0xff]  ;;  %v1587_v61 = vld [vmem:[#allocation2 + $0x142] sm:$0xff]  ;;  %v1523_v54 = vmul.f32 %v2725_v59, %v1490_v10  ;;  %v1233_v42 = vmul.f32 %v1490_v10, %v2702_v27  ;;  %v944_v31 = vmul.f32 %v1490_v10, %v2654_v47 }
 0x169   : > { %v1619_v16 = vmul.f32 %v2730_v63, %v1586_v56  ;;  %v1620_v34 = vmul.f32 %v2730_v63, %v1587_v61  ;;  %v1329_v17 = vmul.f32 %v1586_v56, %v2704_v28  ;;  %v2139_v51 = vadd.f32 %v3276_v39, %v1978_v46 }
 0x16a   : > { %v1458_v40 = vadd.f32 %v1426_v13, %v1360_v52  ;;  %v1168_v57 = vadd.f32 %v1136_v8, %v1071_v18  ;;  %v1330_v35 = vmul.f32 %v1587_v61, %v2704_v28  ;;  %v1041_v18 = vmul.f32 %v1587_v61, %v2672_v58 }
 0x16b   : > { %v1651_v20 = vadd.f32 %v1619_v16, %v1554_v55  ;;  %v1361_v62 = vadd.f32 %v1329_v17, %v1264_v50  ;;  %v2175_v6 = vadd.f32 %v3238_v15, %v2139_v51  ;;  %v1040_v55 = vmul.f32 %v1586_v56, %v2672_v58 }
 0x16c   : > { %v1555_v1 = vadd.f32 %v1523_v54, %v1458_v40  ;;  %v1866_v30 = vpop.f32.mrf.mxu1  ;;  %v1265_v39 = vadd.f32 %v1233_v42, %v1168_v57  ;;  %v976_v13 = vadd.f32 %v944_v31, %v879_v4  ;;  %v1332_v8 = vmul.f32 %v3361_v3, %v2704_v28  ;;  %v3429_v42 = vld [vmem:[#allocation2 + $0x169] sm:$0xff] }
 0x16d   : > { %v1687_v36 = vmul.f32 %v3177_v60, %v1651_v20  ;;  %v1459_v52 = vadd.f32 %v3303_v2, %v1361_v62  ;;  %2208 = vst.msk [vmem:[%s3254_s28 + $0x20] sm:$0xff] %vm2203_vm5, %v2175_v6  ;;  %v1943_v50 = vmul.f32 %v3210_v7, %v1866_v30  ;;  %v1072_v10 = vadd.f32 %v1040_v55, %v975_v5  ;;  %v3414_v2 = vld [vmem:[#allocation2 + $0x168] sm:$0xff]  ;;  %v3418_v6 = vpop.f32.mrf.mxu2 }
 0x16e   : > { %v1652_v25 = vadd.f32 %v1620_v34, %v1555_v1  ;;  %v1362_v16 = vadd.f32 %v1330_v35, %v1265_v39  ;;  %v1073_v30 = vadd.f32 %v1041_v18, %v976_v13  ;;  %v3420_v1 = vld [vmem:[#allocation2 + $0x170] sm:$0xff]  ;;  %v880_v13 = vmul.f32 %v3297_v14, %v2652_v45 }
 0x16f   : > { %v1723_v46 = vadd.f32 %v3197_v22, %v1687_v36  ;;  %v1556_v54 = vadd.f32 %v3330_v21, %v1459_v52  ;;  %v1979_v56 = vadd.f32 %v3221_v29, %v1943_v50  ;;  %v1429_v36 = vmul.f32 %v2710_v41, %v3414_v2  ;;  %v3440_v39 = vld [vmem:[#allocation2 + $0x16a] sm:$0xff] }
 0x170   : > { %v1688_v61 = vmul.f32 %v3177_v60, %v1652_v25  ;;  %v1460_v21 = vadd.f32 %v3307_v0, %v1362_v16  ;;  %v1169_v31 = vadd.f32 %v1137_v32, %v1072_v10  ;;  %v1430_v34 = vmul.f32 %v2710_v41, %v3420_v1  ;;  %v3433_v0 = vld [vmem:[#allocation2 + $0x171] sm:$0xff] }
 0x171   : > { %v1653_v5 = vadd.f32 %v1621_v37, %v1556_v54  ;;  %v2140_v17 = vadd.f32 %v3289_v26, %v1979_v56  ;;  %v1755_v40 = vmax.f32 %v1723_v46, 0.0  ;;  %v1170_v20 = vadd.f32 %v1138_v43, %v1073_v30  ;;  %v3449_v46 = vld [vmem:[#allocation2 + $0x172] sm:$0xff] }
 0x172   : > { %v1724_v51 = vadd.f32 %v3197_v22, %v1688_v61  ;;  %v1557_v57 = vadd.f32 %v3342_v23, %v1460_v21  ;;  %v1266_v62 = vadd.f32 %v1234_v48, %v1169_v31  ;;  %v1526_v37 = vmul.f32 %v2725_v59, %v3429_v42 }
 0x173   : > { %v1689_v35 = vmul.f32 %v3177_v60, %v1653_v5  ;;  %v2176_v32 = vadd.f32 %v3238_v15, %v2140_v17  ;;  %v1267_v4 = vadd.f32 %v1235_v19, %v1170_v20  ;;  %v1527_v43 = vmul.f32 %v2725_v59, %v3433_v0 }
 0x174   : > { %v1756_v26 = vmax.f32 %v1724_v51, 0.0  ;;  %v1869_v52 = vpop.f32.mrf.mxu1  ;;  %v1654_v23 = vadd.f32 %v3371_v24, %v1557_v57  ;;  %v1363_v48 = vadd.f32 %v1331_v44, %v1266_v62  ;;  %v1623_v18 = vmul.f32 %v2730_v63, %v3440_v39 }
 0x175   : > { %v1725_v55 = vadd.f32 %v3197_v22, %v1689_v35  ;;  %2209 = vst.msk [vmem:[%s3254_s28 + $0x28] sm:$0xff] %vm2203_vm5, %v2176_v32  ;;  %v1944_v50 = vmul.f32 %v3210_v7, %v1869_v52  ;;  %v1364_v19 = vadd.f32 %v1332_v8, %v1267_v4  ;;  %v1624_v44 = vmul.f32 %v2730_v63, %v3449_v46  ;;  %v3460_v8 = vpop.f32.mrf.mxu2 }
 0x176   : > { %v1776_v25 = vpack.c.bf16 %v1756_v26, %v1755_v40  ;;  %v1690_v16 = vmul.f32 %v3177_v60, %v1654_v23  ;;  %v1461_v24 = vadd.f32 %v1429_v36, %v1363_v48  ;;  %v881_v54 = vmul.f32 %v3299_v9, %v2652_v45  ;;  %v1399_v48 = vld [vmem:[#allocation2 + $0x188] sm:$0xff] }
 0x177   : > { %v1980_v10 = vadd.f32 %v3221_v29, %v1944_v50  ;;  %v1462_v56 = vadd.f32 %v1430_v34, %v1364_v19  ;;  %v945_v61 = vmul.f32 %v3324_v38, %v2654_v47  ;;  %v946_v14 = vmul.f32 %v3336_v53, %v2654_v47 }
 0x178   : > { %2335 = vmatmul.msk.bf16.gmra.mxu1 %vm737_vm2, %v1776_v25  ;;  %v1726_v30 = vadd.f32 %v3197_v22, %v1690_v16  ;;  %v1757_v36 = vmax.f32 %v1725_v55, 0.0  ;;  %v1558_v21 = vadd.f32 %v1526_v37, %v1461_v24  ;;  %v1042_v9 = vmul.f32 %v3359_v33, %v2672_v58 }
 0x179   : > { %v2141_v5 = vadd.f32 %v3351_v49, %v1980_v10  ;;  %v1559_v31 = vadd.f32 %v1527_v43, %v1462_v56  ;;  %v977_v17 = vadd.f32 %v945_v61, %v880_v13  ;;  %v978_v34 = vadd.f32 %v946_v14, %v881_v54  ;;  %v3737_v49 = vld [vmem:[#allocation6_spill] sm:$0xff] }
 0x17a   : > { %v1758_v51 = vmax.f32 %v1726_v30, 0.0  ;;  %v1655_v40 = vadd.f32 %v1623_v18, %v1558_v21  ;;  %v1043_v38 = vmul.f32 %v3361_v3, %v2672_v58  ;;  %v1139_v53 = vmul.f32 %v3414_v2, %v2691_v11  ;;  %v1398_v3 = vld [vmem:[#allocation2 + $0x180] sm:$0xff]  ;;  %v1496_v61 = vld [vmem:[#allocation2 + $0x189] sm:$0xff] }
 0x17b   : > { %v2177_v20 = vadd.f32 %v3238_v15, %v2141_v5  ;;  %v1656_v57 = vadd.f32 %v1624_v44, %v1559_v31  ;;  %v1074_v35 = vadd.f32 %v1042_v9, %v977_v17  ;;  %v1140_v33 = vmul.f32 %v3420_v1, %v2691_v11  ;;  %v1495_v54 = vld [vmem:[#allocation2 + $0x181] sm:$0xff]  ;;  %v3738_v30 = vld [vmem:[#allocation7_spill] sm:$0xff] }
 0x17c   : > { %v2110_v62 = vmul.f32 %v3737_v49, %v3348_v12  ;;  %v1871_v37 = vpop.f32.mrf.mxu1  ;;  %v1777_v32 = vpack.c.bf16 %v1758_v51, %v1757_v36  ;;  %v1075_v26 = vadd.f32 %v1043_v38, %v978_v34  ;;  %v1236_v4 = vmul.f32 %v3429_v42, %v2702_v27  ;;  %v1592_v34 = vld [vmem:[#allocation2 + $0x182] sm:$0xff] }
 0x17d   : > { %2210 = vst.msk [vmem:[%s3254_s28 + $0x30] sm:$0xff] %vm2203_vm5, %v2177_v20  ;;  %v1945_v43 = vmul.f32 %v3210_v7, %v1871_v37  ;;  %v1692_v52 = vmul.f32 %v3177_v60, %v1656_v57  ;;  %v1171_v23 = vadd.f32 %v1139_v53, %v1074_v35  ;;  %v1237_v55 = vmul.f32 %v3433_v0, %v2702_v27  ;;  %v3495_v16 = vpop.f32.mrf.mxu2  ;;  %v1593_v53 = vld [vmem:[#allocation2 + $0x18a] sm:$0xff] }
 0x17e   : > { %2336 = vmatmul.msk.bf16.vlgmr.msrb.gmra.mxu3 %vm737_vm2, %v1777_v32  ;;  %v1691_v12 = vmul.f32 %v3177_v60, %v1655_v40  ;;  %v1172_v18 = vadd.f32 %v1140_v33, %v1075_v26  ;;  %v1333_v50 = vmul.f32 %v3440_v39, %v2704_v28  ;;  %v1334_v25 = vmul.f32 %v3449_v46, %v2704_v28 }
 0x17f   : > { %v1981_v19 = vadd.f32 %v3221_v29, %v1945_v43  ;;  %v1728_v13 = vadd.f32 %v3197_v22, %v1692_v52  ;;  %v1268_v24 = vadd.f32 %v1236_v4, %v1171_v23  ;;  %v1431_v44 = vmul.f32 %v2710_v41, %v1398_v3 }
 0x180   : > { %v1269_v10 = vadd.f32 %v1237_v55, %v1172_v18  ;;  %v1432_v56 = vmul.f32 %v2710_v41, %v1399_v48  ;;  %v2111_v36 = vmul.f32 %v3737_v49, %v3738_v30  ;;  %v1727_v9 = vadd.f32 %v3197_v22, %v1691_v12  ;;  %v1401_v30 = vld [vmem:[#allocation2 + $0x1a0] sm:$0xff] }
 0x181   : > { %v2142_v14 = vadd.f32 %v2110_v62, %v1981_v19  ;;  %v1365_v21 = vadd.f32 %v1333_v50, %v1268_v24  ;;  %v1760_v5 = vmax.f32 %v1728_v13, 0.0  ;;  %v1528_v17 = vmul.f32 %v2725_v59, %v1495_v54 }
 0x182   : > { %v1366_v31 = vadd.f32 %v1334_v25, %v1269_v10  ;;  %v1529_v38 = vmul.f32 %v2725_v59, %v1496_v61  ;;  %v882_v20 = vmul.f32 %v3414_v2, %v2652_v45  ;;  %v883_v33 = vmul.f32 %v3420_v1, %v2652_v45 }
 0x183   : > { %v2178_v51 = vadd.f32 %v3238_v15, %v2142_v14  ;;  %v1463_v40 = vadd.f32 %v1431_v44, %v1365_v21  ;;  %v947_v62 = vmul.f32 %v3429_v42, %v2654_v47  ;;  %v948_v37 = vmul.f32 %v3433_v0, %v2654_v47 }
 0x184   : > { %v1874_v57 = vpop.f32.mrf.mxu1  ;;  %v1464_v35 = vadd.f32 %v1432_v56, %v1366_v31  ;;  %v1625_v26 = vmul.f32 %v2730_v63, %v1592_v34  ;;  %v1044_v2 = vmul.f32 %v3440_v39, %v2672_v58  ;;  %v1045_v4 = vmul.f32 %v3449_v46, %v2672_v58 }
 0x185   : > { %2211 = vst.msk [vmem:[%s3254_s28 + $0x38] sm:$0xff] %vm2203_vm5, %v2178_v51  ;;  %v1946_v32 = vmul.f32 %v3210_v7, %v1874_v57  ;;  %v1626_v45 = vmul.f32 %v2730_v63, %v1593_v53  ;;  %v979_v1 = vadd.f32 %v947_v62, %v882_v20  ;;  %v980_v43 = vadd.f32 %v948_v37, %v883_v33  ;;  %v3524_v23 = vpop.f32.mrf.mxu2  ;;  %v1497_v51 = vld [vmem:[#allocation2 + $0x199] sm:$0xff] }
 0x186   : > { %v1141_v42 = vmul.f32 %v1398_v3, %v2691_v11  ;;  %v1560_v0 = vadd.f32 %v1528_v17, %v1463_v40  ;;  %v1561_v52 = vadd.f32 %v1529_v38, %v1464_v35  ;;  %v1142_v55 = vmul.f32 %v1399_v48, %v2691_v11  ;;  %v1498_v40 = vld [vmem:[#allocation2 + $0x1a1] sm:$0xff] }
 0x187   : > { %v1982_v47 = vadd.f32 %v3221_v29, %v1946_v32  ;;  %v1076_v12 = vadd.f32 %v1044_v2, %v979_v1  ;;  %v1077_v18 = vadd.f32 %v1045_v4, %v980_v43  ;;  %v1238_v39 = vmul.f32 %v1495_v54, %v2702_v27  ;;  %v1594_v32 = vld [vmem:[#allocation2 + $0x19a] sm:$0xff]  ;;  %v1595_v2 = vld [vmem:[#allocation2 + $0x1a2] sm:$0xff] }
 0x188   : > { %v1759_v46 = vmax.f32 %v1727_v9, 0.0  ;;  %v1239_v50 = vmul.f32 %v1496_v61, %v2702_v27  ;;  %v1657_v24 = vadd.f32 %v1625_v26, %v1560_v0  ;;  %v1658_v44 = vadd.f32 %v1626_v45, %v1561_v52  ;;  %v1400_v61 = vld [vmem:[#allocation2 + $0x198] sm:$0xff] }
 0x189   : > { %v2143_v58 = vadd.f32 %v2111_v36, %v1982_v47  ;;  %v1173_v25 = vadd.f32 %v1141_v42, %v1076_v12  ;;  %v1174_v19 = vadd.f32 %v1142_v55, %v1077_v18  ;;  %v1335_v11 = vmul.f32 %v1592_v34, %v2704_v28 }
 0x18a   : > { %v1778_v13 = vpack.c.bf16 %v1760_v5, %v1759_v46  ;;  %v1336_v48 = vmul.f32 %v1593_v53, %v2704_v28  ;;  %v2112_v54 = vmul.f32 %v3737_v49, %v3418_v6  ;;  %v1693_v21 = vmul.f32 %v3177_v60, %v1657_v24 }
 0x18b   : > { %v2179_v3 = vadd.f32 %v3238_v15, %v2143_v58  ;;  %v1270_v56 = vadd.f32 %v1238_v39, %v1173_v25  ;;  %v1271_v14 = vadd.f32 %v1239_v50, %v1174_v19  ;;  %v1694_v9 = vmul.f32 %v3177_v60, %v1658_v44 }
 0x18c   : > { %v1876_v10 = vpop.f32.mrf.mxu1  ;;  %v1433_v17 = vmul.f32 %v2710_v41, %v1400_v61  ;;  %v1434_v6 = vmul.f32 %v2710_v41, %v1401_v30  ;;  %v1729_v53 = vadd.f32 %v3197_v22, %v1693_v21  ;;  %v1530_v62 = vmul.f32 %v2725_v59, %v1497_v51 }
 0x18d   : > { %2212 = vst.msk [vmem:[%s3254_s28 + $0x40] sm:$0xff] %vm2203_vm5, %v2179_v3  ;;  %v1947_v27 = vmul.f32 %v3210_v7, %v1876_v10  ;;  %v2051_v5 = vpop.f32.mrf.mxu2  ;;  %v1367_v31 = vadd.f32 %v1335_v11, %v1270_v56  ;;  %v1368_v28 = vadd.f32 %v1336_v48, %v1271_v14  ;;  %v1730_v20 = vadd.f32 %v3197_v22, %v1694_v9 }
 0x18e   : > { %2337 = vmatmul.msk.bf16.gmra.mxu3 %vm737_vm2, %v1778_v13  ;;  %v1531_v37 = vmul.f32 %v2725_v59, %v1498_v40  ;;  %v2113_v41 = vmul.f32 %v3737_v49, %v3460_v8  ;;  %v1761_v45 = vmax.f32 %v1729_v53, 0.0  ;;  %v1627_v1 = vmul.f32 %v2730_v63, %v1594_v32 }
 0x18f   : > { %v1983_v36 = vadd.f32 %v3221_v29, %v1947_v27  ;;  %v1465_v35 = vadd.f32 %v1433_v17, %v1367_v31  ;;  %v1466_v33 = vadd.f32 %v1434_v6, %v1368_v28  ;;  %v1762_v43 = vmax.f32 %v1730_v20, 0.0  ;;  %v3588_v28 = vld [vmem:[%s3724_s11] ss:$0 sm:$0xff]  ;;  %v3739_v20 = vld [vmem:[#allocation3_spill] sm:$0xff] }
 0x190   : > { %v1628_v59 = vmul.f32 %v2730_v63, %v1595_v2  ;;  %v2114_v58 = vmul.f32 %v3737_v49, %v3495_v16  ;;  %v2115_v10 = vmul.f32 %v3737_v49, %v3524_v23 }
 0x191   : > { %v2144_v34 = vadd.f32 %v2112_v54, %v1983_v36  ;;  %v1562_v42 = vadd.f32 %v1530_v62, %v1465_v35  ;;  %v1563_v47 = vadd.f32 %v1531_v37, %v1466_v33  ;;  %v1779_v8 = vpack.c.bf16 %v1762_v43, %v1761_v45 }
 0x193   : > { %v2180_v38 = vadd.f32 %v3238_v15, %v2144_v34  ;;  %v1659_v18 = vadd.f32 %v1627_v1, %v1562_v42  ;;  %v1660_v39 = vadd.f32 %v1628_v59, %v1563_v47  ;;  %v3740_v47 = vld [vmem:[#allocation4_spill] sm:$0xff] }
 0x194   : > { %v1879_v57 = vpop.f32.mrf.mxu1 }
 0x195   : > { %2213 = vst.msk [vmem:[%s3254_s28 + $0x48] sm:$0xff] %vm2203_vm5, %v2180_v38  ;;  %v1948_v26 = vmul.f32 %v3210_v7, %v1879_v57  ;;  %v2054_v52 = vpop.f32.mrf.mxu2  ;;  %v1695_v50 = vmul.f32 %v3177_v60, %v1659_v18  ;;  %v1696_v25 = vmul.f32 %v3177_v60, %v1660_v39 }
 0x197   : > { %v1984_v4 = vadd.f32 %v3221_v29, %v1948_v26  ;;  %v1731_v44 = vadd.f32 %v3197_v22, %v1695_v50  ;;  %v1732_v16 = vadd.f32 %v3197_v22, %v1696_v25  ;;  %v2116_v22 = vmul.f32 %v3737_v49, %v2051_v5 }
 0x198   : > { %v2117_v49 = vmul.f32 %v3588_v28, %v2054_v52 }
 0x199   : > { %v2145_v0 = vadd.f32 %v2113_v41, %v1984_v4  ;;  %v1763_v60 = vmax.f32 %v1731_v44, 0.0  ;;  %v1764_v11 = vmax.f32 %v1732_v16, 0.0 }
 0x19b   : > { %v2181_v55 = vadd.f32 %v3238_v15, %v2145_v0  ;;  %v1780_v61 = vpack.c.bf16 %v1764_v11, %v1763_v60 }
 0x19c   : > { %v1881_v12 = vpop.f32.mrf.mxu1 }
 0x19d   : > { %2214 = vst.msk [vmem:[%s3254_s28 + $0x50] sm:$0xff] %vm2203_vm5, %v2181_v55  ;;  %v1949_v46 = vmul.f32 %v3210_v7, %v1881_v12  ;;  %v2056_v13 = vpop.f32.mrf.mxu2 }
 0x19e   : > { %2338 = vmatmul.msk.bf16.gmra.mxu3 %vm737_vm2, %v1779_v8  ;;  %v2118_v38 = vmul.f32 %v3588_v28, %v2056_v13 }
 0x19f   : > { %v1985_v63 = vadd.f32 %v3221_v29, %v1949_v46 }
 0x1a1   : > { %v2146_v19 = vadd.f32 %v2114_v58, %v1985_v63 }
 0x1a3   : > { %v2182_v3 = vadd.f32 %v3238_v15, %v2146_v19  ;;  %v3741_v19 = vld [vmem:[#allocation5_spill] sm:$0xff] }
 0x1a4   : > { %v1884_v24 = vpop.f32.mrf.mxu1 }
 0x1a5   : > { %2215 = vst.msk [vmem:[%s3254_s28 + $0x58] sm:$0xff] %vm2203_vm5, %v2182_v3  ;;  %v1950_v56 = vmul.f32 %v3210_v7, %v1884_v24  ;;  %v2059_v23 = vpop.f32.mrf.mxu2 }
 0x1a6   : > { %v2119_v32 = vmul.f32 %v3588_v28, %v2059_v23 }
 0x1a7   : > { %v1986_v14 = vadd.f32 %v3221_v29, %v1950_v56 }
 0x1a9   : > { %v2147_v48 = vadd.f32 %v2115_v10, %v1986_v14 }
 0x1ab   : > { %v2183_v54 = vadd.f32 %v3238_v15, %v2147_v48 }
 0x1ac   : > { %v1886_v27 = vpop.f32.mrf.mxu1 }
 0x1ad   : > { %2216 = vst.msk [vmem:[%s3254_s28 + $0x60] sm:$0xff] %vm2203_vm5, %v2183_v54  ;;  %v1951_v30 = vmul.f32 %v3210_v7, %v1886_v27  ;;  %v2061_v6 = vpop.f32.mrf.mxu2 }
 0x1ae   : > { %2339 = vmatmul.msk.bf16.gmra.mxu3 %vm737_vm2, %v1780_v61  ;;  %v2120_v43 = vmul.f32 %v3588_v28, %v2061_v6  ;;  %v3642_v61 = vld [vmem:[%s3721_s8] ss:$0 sm:$0xff] }
 0x1af   : > { %v1987_v36 = vadd.f32 %v3221_v29, %v1951_v30 }
 0x1b1   : > { %v2148_v21 = vadd.f32 %v2116_v22, %v1987_v36 }
 0x1b3   : > { %v2184_v9 = vadd.f32 %v3238_v15, %v2148_v21 }
 0x1b4   : > { %v1889_v31 = vpop.f32.mrf.mxu1 }
 0x1b5   : > { %2217 = vst.msk [vmem:[%s3254_s28 + $0x68] sm:$0xff] %vm2203_vm5, %v2184_v9  ;;  %v1952_v5 = vmul.f32 %v3210_v7, %v1889_v31  ;;  %v2064_v33 = vpop.f32.mrf.mxu2 }
 0x1b6   : > { %v2121_v12 = vmul.f32 %v3588_v28, %v2064_v33 }
 0x1b7   : > { %v1988_v17 = vadd.f32 %v3221_v29, %v1952_v5 }
 0x1b9   : > { %v2149_v34 = vadd.f32 %v2117_v49, %v1988_v17  ;;  %v3654_v49 = vld [vmem:[%s3722_s9] ss:$0 sm:$0xff] }
 0x1bb   : > { %v2185_v51 = vadd.f32 %v3238_v15, %v2149_v34 }
 0x1bc   : > { %v1891_v40 = vpop.f32.mrf.mxu1 }
 0x1bd   : > { %2218 = vst.msk [vmem:[%s3254_s28 + $0x70] sm:$0xff] %vm2203_vm5, %v2185_v51  ;;  %v1953_v53 = vmul.f32 %v3210_v7, %v1891_v40  ;;  %v2066_v45 = vpop.f32.mrf.mxu2 }
 0x1be   : > { %2353 = vmatmul.msk.bf16.vlgmr.msra.gmra.mxu3 %vm491_vm1, %v3739_v20  ;;  %v2122_v50 = vmul.f32 %v3588_v28, %v2066_v45 }
 0x1bf   : > { %v1989_v57 = vadd.f32 %v3221_v29, %v1953_v53 }
 0x1c1   : > { %v2150_v35 = vadd.f32 %v2118_v38, %v1989_v57 }
 0x1c3   : > { %v2186_v62 = vadd.f32 %v3238_v15, %v2150_v35 }
 0x1c4   : > { %v1894_v37 = vpop.f32.mrf.mxu1 }
 0x1c5   : > { %2219 = vst.msk [vmem:[%s3254_s28 + $0x78] sm:$0xff] %vm2203_vm5, %v2186_v62  ;;  %v1954_v41 = vmul.f32 %v3210_v7, %v1894_v37  ;;  %v2069_v18 = vpop.f32.mrf.mxu2 }
 0x1c6   : > { %v2123_v10 = vmul.f32 %v3588_v28, %v2069_v18 }
 0x1c7   : > { %v1990_v26 = vadd.f32 %v3221_v29, %v1954_v41 }
 0x1c9   : > { %v2151_v2 = vadd.f32 %v2119_v32, %v1990_v26 }
 0x1cb   : > { %v2187_v4 = vadd.f32 %v3238_v15, %v2151_v2 }
 0x1cc   : > { %v1896_v1 = vpop.f32.mrf.mxu1 }
 0x1cd   : > { %2220 = vst.msk [vmem:[%s3254_s28 + $0x80] sm:$0xff] %vm2203_vm5, %v2187_v4  ;;  %v1955_v42 = vmul.f32 %v3210_v7, %v1896_v1  ;;  %v2071_v13 = vpop.f32.mrf.mxu2 }
 0x1ce   : > { %2354 = vmatmul.msk.bf16.gmra.mxu3 %vm491_vm1, %v3740_v47  ;;  %v2124_v27 = vmul.f32 %v3588_v28, %v2071_v13 }
 0x1cf   : > { %v1991_v59 = vadd.f32 %v3221_v29, %v1955_v42 }
 0x1d1   : > { %v2152_v0 = vadd.f32 %v2120_v43, %v1991_v59  ;;  %v2390_v43 = vld [vmem:[%s3725_s12] ss:$0 sm:$0xff] }
 0x1d3   : > { %v2188_v52 = vadd.f32 %v3238_v15, %v2152_v0 }
 0x1d4   : > { %v1899_v55 = vpop.f32.mrf.mxu1 }
 0x1d5   : > { %2221 = vst.msk [vmem:[%s3254_s28 + $0x88] sm:$0xff] %vm2203_vm5, %v2188_v52  ;;  %v1956_v8 = vmul.f32 %v3210_v7, %v1899_v55  ;;  %v2074_v11 = vpop.f32.mrf.mxu2 }
 0x1d6   : > { %v2125_v9 = vmul.f32 %v3588_v28, %v2074_v11 }
 0x1d7   : > { %v1992_v39 = vadd.f32 %v3221_v29, %v1956_v8 }
 0x1d9   : > { %v2153_v58 = vadd.f32 %v2121_v12, %v1992_v39 }
 0x1db   : > { %v2189_v46 = vadd.f32 %v3238_v15, %v2153_v58 }
 0x1dc   : > { %v1901_v63 = vpop.f32.mrf.mxu1 }
 0x1dd   : > { %2222 = vst.msk [vmem:[%s3254_s28 + $0x90] sm:$0xff] %vm2203_vm5, %v2189_v46  ;;  %v1957_v25 = vmul.f32 %v3210_v7, %v1901_v63  ;;  %v2076_v36 = vpop.f32.mrf.mxu2 }
 0x1de   : > { %2355 = vmatmul.msk.bf16.gmra.mxu3 %vm491_vm1, %v3741_v19  ;;  %v2126_v34 = vmul.f32 %v3588_v28, %v2076_v36 }
 0x1df   : > { %v1993_v3 = vadd.f32 %v3221_v29, %v1957_v25 }
 0x1e1   : > { %v2154_v24 = vadd.f32 %v2122_v50, %v1993_v3 }
 0x1e3   : > { %v2190_v44 = vadd.f32 %v3238_v15, %v2154_v24 }
 0x1e4   : > { %v1904_v16 = vpop.f32.mrf.mxu1 }
 0x1e5   : > { %2223 = vst.msk [vmem:[%s3254_s28 + $0x98] sm:$0xff] %vm2203_vm5, %v2190_v44  ;;  %v1958_v56 = vmul.f32 %v3210_v7, %v1904_v16  ;;  %v2079_v40 = vpop.f32.mrf.mxu2 }
 0x1e6   : > { %v2127_v35 = vmul.f32 %v3588_v28, %v2079_v40 }
 0x1e7   : > { %v1994_v14 = vadd.f32 %v3221_v29, %v1958_v56 }
 0x1e9   : > { %v2155_v60 = vadd.f32 %v2123_v10, %v1994_v14 }
 0x1eb   : > { %v2191_v48 = vadd.f32 %v3238_v15, %v2155_v60 }
 0x1ec   : > { %v1906_v54 = vpop.f32.mrf.mxu1 }
 0x1ed   : > { %2224 = vst.msk [vmem:[%s3254_s28 + $0xa0] sm:$0xff] %vm2203_vm5, %v2191_v48  ;;  %v1959_v22 = vmul.f32 %v3642_v61, %v1906_v54  ;;  %v2081_v32 = vpop.f32.mrf.mxu2 }
 0x1ee   : > { %v2128_v4 = vmul.f32 %v3588_v28, %v2081_v32 }
 0x1ef   : > { %v1995_v7 = vadd.f32 %v3221_v29, %v1959_v22 }
 0x1f1   : > { %v2156_v30 = vadd.f32 %v2124_v27, %v1995_v7 }
 0x1f3   : > { %v2192_v23 = vadd.f32 %v3238_v15, %v2156_v30 }
 0x1f5   : > { %v1909_v21 = vpop.f32.mrf.mxu1  ;;  %2225 = vst.msk [vmem:[%s3254_s28 + $0xa8] sm:$0xff] %vm2203_vm5, %v2192_v23 }
 0x1f6   : > { %v1960_v31 = vmul.f32 %v3642_v61, %v1909_v21 }
 0x1f8   : > { %v1996_v5 = vadd.f32 %v3654_v49, %v1960_v31 }
 0x1fa   : > { %v2157_v29 = vadd.f32 %v2125_v9, %v1996_v5 }
 0x1fc   : > { %v2193_v17 = vadd.f32 %v3238_v15, %v2157_v29 }
 0x1fd   : > { %v1911_v6 = vpop.f32.mrf.mxu1 }
 0x1fe   : > { %2226 = vst.msk [vmem:[%s3254_s28 + $0xb0] sm:$0xff] %vm2203_vm5, %v2193_v17  ;;  %v1961_v51 = vmul.f32 %v3642_v61, %v1911_v6 }
 0x200   : > { %v1997_v38 = vadd.f32 %v3654_v49, %v1961_v51 }
 0x201   : > { %v1914_v20 = vpop.f32.mrf.mxu3 }
 0x202   : > { %v2158_v53 = vadd.f32 %v2126_v34, %v1997_v38  ;;  %v1962_v57 = vmul.f32 %v3642_v61, %v1914_v20 }
 0x204   : > { %v2194_v33 = vadd.f32 %v3238_v15, %v2158_v53  ;;  %v1998_v62 = vadd.f32 %v3654_v49, %v1962_v57 }
 0x206   : > { %2227 = vst.msk [vmem:[%s3254_s28 + $0xb8] sm:$0xff] %vm2203_vm5, %v2194_v33  ;;  %v2159_v37 = vadd.f32 %v2127_v35, %v1998_v62 }
 0x208   : > { %v2195_v41 = vadd.f32 %v3238_v15, %v2159_v37 }
 0x209   : > { %v1916_v26 = vpop.f32.mrf.mxu3 }
 0x20a   : > { %2228 = vst.msk [vmem:[%s3254_s28 + $0xc0] sm:$0xff] %vm2203_vm5, %v2195_v41  ;;  %v1963_v2 = vmul.f32 %v3642_v61, %v1916_v26 }
 0x20c   : > { %v1999_v45 = vadd.f32 %v3654_v49, %v1963_v2 }
 0x20e   : > { %v2160_v1 = vadd.f32 %v2128_v4, %v1999_v45 }
 0x210   : > { %v2196_v42 = vadd.f32 %v2390_v43, %v2160_v1 }
 0x211   : > { %v1919_v47 = vpop.f32.mrf.mxu3 }
 0x212   : > { %2229 = vst.msk [vmem:[%s3254_s28 + $0xc8] sm:$0xff] %vm2203_vm5, %v2196_v42  ;;  %v1964_v12 = vmul.f32 %v3642_v61, %v1919_v47 }
 0x214   : > { %v2000_v18 = vadd.f32 %v3654_v49, %v1964_v12 }
 0x219   : > { %v1921_v15 = vpop.f32.mrf.mxu3 }
 0x21a   : > { %v1965_v46 = vmul.f32 %v3642_v61, %v1921_v15 }
 0x21c   : > { %v2001_v25 = vadd.f32 %v3654_v49, %v1965_v46 }
 0x221   : > { %v1924_v59 = vpop.f32.mrf.mxu3 }
 0x222   : > { %v1966_v13 = vmul.f32 %v3642_v61, %v1924_v59 }
 0x224   : > { %v2002_v16 = vadd.f32 %v3654_v49, %v1966_v13 }
 0x229   : > { %v1926_v0 = vpop.f32.mrf.mxu3 }
 0x22a   : > { %v1967_v14 = vmul.f32 %v3642_v61, %v1926_v0 }
 0x22c   : > { %v2003_v48 = vadd.f32 %v3654_v49, %v1967_v14 }
 0x231   : > { %v1929_v52 = vpop.f32.mrf.mxu3 }
 0x232   : > { %v1968_v22 = vmul.f32 %v3642_v61, %v1929_v52 }
 0x234   : > { %v2004_v23 = vadd.f32 %v3654_v49, %v1968_v22 }
 0x239   : > { %v1931_v55 = vpop.f32.mrf.mxu3 }
 0x23a   : > { %v1969_v9 = vmul.f32 %v3642_v61, %v1931_v55 }
 0x23c   : > { %v2005_v29 = vadd.f32 %v3654_v49, %v1969_v9 }
 0x241   : > { %v2084_v8 = vpop.f32.mrf.mxu3 }
 0x242   : > { %v2129_v39 = vmul.f32 %v3588_v28, %v2084_v8 }
 0x244   : > { %v2161_v58 = vadd.f32 %v2129_v39, %v2000_v18 }
 0x246   : > { %v2197_v63 = vadd.f32 %v2390_v43, %v2161_v58 }
 0x248   : > { %2230 = vst.msk [vmem:[%s3254_s28 + $0xd0] sm:$0xff] %vm2203_vm5, %v2197_v63 }
 0x249   : > { %v2086_v50 = vpop.f32.mrf.mxu3 }
 0x24a   : > { %v2130_v19 = vmul.f32 %v3588_v28, %v2086_v50 }
 0x24c   : > { %v2162_v3 = vadd.f32 %v2130_v19, %v2001_v25 }
 0x24e   : > { %v2198_v24 = vadd.f32 %v2390_v43, %v2162_v3 }
 0x250   : > { %2231 = vst.msk [vmem:[%s3254_s28 + $0xd8] sm:$0xff] %vm2203_vm5, %v2198_v24 }
 0x251   : > { %v2089_v44 = vpop.f32.mrf.mxu3 }
 0x252   : > { %v2131_v10 = vmul.f32 %v3588_v28, %v2089_v44 }
 0x254   : > { %v2163_v56 = vadd.f32 %v2131_v10, %v2002_v16 }
 0x256   : > { %v2199_v60 = vadd.f32 %v2390_v43, %v2163_v56 }
 0x258   : > { %2232 = vst.msk [vmem:[%s3254_s28 + $0xe0] sm:$0xff] %vm2203_vm5, %v2199_v60 }
 0x259   : > { %v2091_v11 = vpop.f32.mrf.mxu3 }
 0x25a   : > { %v2132_v54 = vmul.f32 %v3588_v28, %v2091_v11 }
 0x25c   : > { %v2164_v27 = vadd.f32 %v2132_v54, %v2003_v48 }
 0x25e   : > { %v2200_v7 = vadd.f32 %v2390_v43, %v2164_v27 }
 0x260   : > { %2233 = vst.msk [vmem:[%s3254_s28 + $0xe8] sm:$0xff] %vm2203_vm5, %v2200_v7 }
 0x261   : > { %v2094_v30 = vpop.f32.mrf.mxu3 }
 0x262   : > { %v2133_v36 = vmul.f32 %v3588_v28, %v2094_v30 }
 0x264   : > { %v2165_v21 = vadd.f32 %v2133_v36, %v2004_v23 }
 0x266   : > { %v2201_v31 = vadd.f32 %v2390_v43, %v2165_v21 }
 0x268   : > { %2234 = vst.msk [vmem:[%s3254_s28 + $0xf0] sm:$0xff] %vm2203_vm5, %v2201_v31 }
 0x269   : > { %v2096_v5 = vpop.f32.mrf.mxu3 }
 0x26a   : > { %v2134_v17 = vmul.f32 %v3588_v28, %v2096_v5 }
 0x26c   : > { %v2166_v6 = vadd.f32 %v2134_v17, %v2005_v29 }
 0x26e   : > { %v2202_v34 = vadd.f32 %v2390_v43, %v2166_v6 }
 0x270   : > { %2235 = vst.msk [vmem:[%s3254_s28 + $0xf8] sm:$0xff] %vm2203_vm5, %v2202_v34 }
 0x271 PF: > { %s23_s25 = sadd.s32 1, %s2397_s25  }
 0x272   : > { %p20_p4 = scmp.ge.s32.totalorder %s23_s25, 4  }
 0x274   :  { %22 = sbr.rel (!%p20_p4) target bundleno = 1 (0x1), region = 105 }

</bundles_post_ra>
